<compile_context>
chip_gen: v7x
topology: tpu7x:2x2x1
jax: 0.10.0
libtpu: 0.0.40
codegen_flags: <defaults>
</compile_context>

<pallas_src>
import functools
import math

import jax
import jax.numpy as jnp
from jax.experimental import pallas as pl
from jax.experimental.pallas import tpu as pltpu

# Small synthetic BertConfig (same structure as the PyTorch dataclass).
CFG = dict(
    vocab_size=128,
    hidden_size=32,
    intermediate_size=64,
    num_layers=2,
    num_heads=4,
    head_size=8,
    max_position_embeddings=16,
    type_vocab_size=2,
    layer_norm_epsilon=1e-12,
)

# Full-array, VMEM-resident spec (used for all weights; with a constant view
# across the batch grid they are DMA'd into VMEM once and reused).
_VMEM = pl.BlockSpec(memory_space=pltpu.MemorySpace.VMEM)


def _vmem_limit_bytes():
    # ~25% headroom under the physical VMEM of the current generation
    # (v5e/v6e: 128 MiB, v7x: 64 MiB), instead of a hard-coded 64 MiB.
    try:
        return int(pltpu.get_tpu_info().vmem_capacity_bytes * 3 // 4)
    except Exception:
        return 48 * 1024 * 1024


# ---------------------------------------------------------------------------
# In-kernel helpers (all elementwise math stays f32 on every generation)
# ---------------------------------------------------------------------------
def _ln(x, w, b, eps):
    # Matches torch LayerNorm: population variance (unbiased=False), last dim.
    mean = jnp.mean(x, axis=-1, keepdims=True)
    var = jnp.mean(jnp.square(x - mean), axis=-1, keepdims=True)
    return (x - mean) * jax.lax.rsqrt(var + eps) * w + b


def _gelu(x):
    # Exact GELU (matches F.gelu default, erf-based).
    return 0.5 * x * (1.0 + jax.lax.erf(x * (1.0 / math.sqrt(2.0))))


# ---------------------------------------------------------------------------
# Fused Pallas kernel (one grid point = one batch element's full forward):
# embeddings -> L transformer blocks -> LM head
# ---------------------------------------------------------------------------
def bert_kernel(tok_ref, typ_ref, pad_ref,
                emb_all_ref, emb_lnw_ref, emb_lnb_ref,
                wq_ref, bq_ref, wk_ref, bk_ref, wv_ref, bv_ref,
                wo_ref, bo_ref, a_lnw_ref, a_lnb_ref,
                w1_ref, b1_ref, w2_ref, b2_ref, m_lnw_ref, m_lnb_ref,
                lm_w_ref, lm_b_ref, lm_lnw_ref, lm_lnb_ref,
                emb_t_ref, ub_ref,
                o_ref, *, num_layers, num_heads, head_size, eps, pos_offset):
    f32 = jnp.float32
    bf16 = jnp.bfloat16
    S = tok_ref.shape[0]                  # seq rows of this batch element
    E, H = emb_all_ref.shape              # E = vocab + type_vocab + max_pos
    D = num_heads * head_size

    # ---- embeddings: token + type + position via one bf16 one-hot matmul ---
    # ids are pre-offset into the concatenated table; the three ranges are
    # disjoint so a single boolean OR builds the summed one-hot (one cast).
    # TODO(synk): at a real vocab size (28996) this one-hot gather must become
    # a scalar-prefetched / manual-DMA row gather; fine for the toy V=128.
    lane = jax.lax.broadcasted_iota(jnp.int32, (S, E), 1)
    row = jax.lax.broadcasted_iota(jnp.int32, (S, E), 0)     # position index
    hit = ((tok_ref[...] == lane) | (typ_ref[...] == lane)
           | (lane == row + pos_offset))
    onehot = hit.astype(f32).astype(bf16)
    x = jnp.dot(onehot, emb_all_ref[...], preferred_element_type=f32)
    x = _ln(x, emb_lnw_ref[...], emb_lnb_ref[...], eps)

    # Additive key-pad mask for this batch element, broadcast over (head, q).
    mask = pad_ref[...].reshape(1, 1, S)
    scale = 1.0 / math.sqrt(head_size)

    # TODO(synk): at production sizes (L=12, H=768) this static unroll with
    # all-VMEM-resident stacked weights becomes a grid=(L,) "arbitrary" axis
    # with per-layer blocked weight specs streamed HBM->VMEM.
    for l in range(num_layers):           # static unroll (L=2 here)
        # -------------------- self-attention + residual + LN ---------------
        resid = x
        x_bf = x.astype(bf16)
        # Output-transposed projections: (D, S) so splitting heads is a free
        # sublane-dim reshape (no lane-axis slicing).
        qT = jnp.einsum('dh,sh->ds', wq_ref[l], x_bf,
                        preferred_element_type=f32) + bq_ref[l]
        kT = jnp.einsum('dh,sh->ds', wk_ref[l], x_bf,
                        preferred_element_type=f32) + bk_ref[l]
        vT = jnp.einsum('dh,sh->ds', wv_ref[l], x_bf,
                        preferred_element_type=f32) + bv_ref[l]
        q3 = qT.reshape(num_heads, head_size, S).astype(bf16)   # (h, d, q)
        k3 = kT.reshape(num_heads, head_size, S).astype(bf16)   # (h, d, k)
        v3 = vT.reshape(num_heads, head_size, S).astype(bf16)   # (h, d, k)

        # Scores: direct head-dim contraction of the transposed projections
        # (no identity-matmul re-orientation, no O(N^2) eye buffer).
        s = jnp.einsum('hdq,hdk->hqk', q3, k3,
                       preferred_element_type=f32) * scale
        s = s + mask                              # padding-key mask
        s = s - jnp.max(s, axis=-1, keepdims=True)
        p = jnp.exp(s)
        p = p * pl.reciprocal(jnp.sum(p, axis=-1, keepdims=True), approx=True)

        # Context produced transposed (h, d, q); merge heads for free to
        # (D, S) and do ONE full-D-contraction output projection.
        ctxT = jnp.einsum('hdk,hqk->hdq', v3, p.astype(bf16),
                          preferred_element_type=f32)
        ctxT = ctxT.reshape(D, S).astype(bf16)
        attn_out = jnp.einsum('ds,do->so', ctxT, wo_ref[l],
                              preferred_element_type=f32) + bo_ref[l]
        x = _ln(attn_out + resid, a_lnw_ref[l], a_lnb_ref[l], eps)

        # -------------------- MLP + residual + LN --------------------------
        resid = x
        h1 = jnp.dot(x.astype(bf16), w1_ref[l],
                     preferred_element_type=f32) + b1_ref[l]
        h1 = _gelu(h1)
        y = jnp.dot(h1.astype(bf16), w2_ref[l],
                    preferred_element_type=f32) + b2_ref[l]
        x = _ln(y + resid, m_lnw_ref[l], m_lnb_ref[l], eps)

    # ------------------------------ LM head --------------------------------
    y = jnp.dot(x.astype(bf16), lm_w_ref[...],
                preferred_element_type=f32) + lm_b_ref[...]
    y = _gelu(y)
    y = _ln(y, lm_lnw_ref[...], lm_lnb_ref[...], eps)
    # Pre-transposed embedding table (H, V): lane-dense logits output.
    o_ref[...] = (jnp.dot(y.astype(bf16), emb_t_ref[...],
                          preferred_element_type=f32)
                  + ub_ref[...]).astype(o_ref.dtype)


# ---------------------------------------------------------------------------
# Parameter initialization (deterministic, synthetic)
# ---------------------------------------------------------------------------
def init_params(key, cfg):
    H = cfg['hidden_size']
    I = cfg['intermediate_size']
    D = cfg['num_heads'] * cfg['head_size']
    V = cfg['vocab_size']
    P = cfg['max_position_embeddings']
    T = cfg['type_vocab_size']

    def nxt():
        nonlocal key
        key, sub = jax.random.split(key)
        return sub

    def lin(i, o):
        w = 0.02 * jax.random.normal(nxt(), (i, o), jnp.float32)
        b = jnp.zeros((o,), jnp.float32)
        return w, b

    params = {
        'token_emb': 0.02 * jax.random.normal(nxt(), (V, H), jnp.float32),
        'pos_emb': 0.02 * jax.random.normal(nxt(), (P, H), jnp.float32),
        'type_emb': 0.02 * jax.random.normal(nxt(), (T, H), jnp.float32),
        'emb_ln_w': jnp.ones((H,), jnp.float32),
        'emb_ln_b': jnp.zeros((H,), jnp.float32),
    }
    blocks = []
    for _ in range(cfg['num_layers']):
        blk = {}
        blk['wq'], blk['bq'] = lin(H, D)
        blk['wk'], blk['bk'] = lin(H, D)
        blk['wv'], blk['bv'] = lin(H, D)
        blk['wo'], blk['bo'] = lin(D, H)
        blk['attn_ln_w'] = jnp.ones((H,), jnp.float32)
        blk['attn_ln_b'] = jnp.zeros((H,), jnp.float32)
        blk['w1'], blk['b1'] = lin(H, I)
        blk['w2'], blk['b2'] = lin(I, H)
        blk['mlp_ln_w'] = jnp.ones((H,), jnp.float32)
        blk['mlp_ln_b'] = jnp.zeros((H,), jnp.float32)
        blocks.append(blk)
    params['blocks'] = blocks
    params['lm_w'], params['lm_b'] = lin(H, H)
    params['lm_ln_w'] = jnp.ones((H,), jnp.float32)
    params['lm_ln_b'] = jnp.zeros((H,), jnp.float32)
    params['unembed_bias'] = jnp.zeros((V,), jnp.float32)
    return params


# ---------------------------------------------------------------------------
# One-time weight preparation: stacking, transposes, concat, bf16 casts.
# Done ONCE at load time, not on every forward call.
# ---------------------------------------------------------------------------
def prepare_weights(params):
    bf16 = jnp.bfloat16

    def row(p):   # (D,) -> (1, D): sublane-broadcast row bias
        return p.reshape(1, -1)

    def col(p):   # (D,) -> (D, 1): lane-broadcast column bias (transposed proj)
        return p.reshape(-1, 1)

    blocks = params['blocks']

    def stk(f):   # stack per-layer tensors along a leading L axis
        return jnp.stack([f(blk) for blk in blocks])

    emb_all = jnp.concatenate(
        [params['token_emb'], params['type_emb'], params['pos_emb']], axis=0)

    # Matmul operands in bf16; biases and LayerNorm params stay f32.
    return (
        emb_all.astype(bf16),
        row(params['emb_ln_w']), row(params['emb_ln_b']),
        stk(lambda b_: b_['wq'].T).astype(bf16), stk(lambda b_: col(b_['bq'])),
        stk(lambda b_: b_['wk'].T).astype(bf16), stk(lambda b_: col(b_['bk'])),
        stk(lambda b_: b_['wv'].T).astype(bf16), stk(lambda b_: col(b_['bv'])),
        stk(lambda b_: b_['wo']).astype(bf16), stk(lambda b_: row(b_['bo'])),
        stk(lambda b_: row(b_['attn_ln_w'])), stk(lambda b_: row(b_['attn_ln_b'])),
        stk(lambda b_: b_['w1']).astype(bf16), stk(lambda b_: row(b_['b1'])),
        stk(lambda b_: b_['w2']).astype(bf16), stk(lambda b_: row(b_['b2'])),
        stk(lambda b_: row(b_['mlp_ln_w'])), stk(lambda b_: row(b_['mlp_ln_b'])),
        params['lm_w'].astype(bf16), row(params['lm_b']),
        row(params['lm_ln_w']), row(params['lm_ln_b']),
        params['token_emb'].T.astype(bf16),     # (H, V) pre-transposed unembed
        row(params['unembed_bias']),
    )


# ---------------------------------------------------------------------------
# Forward pass: thin JAX wrapper, batch-gridded fused pallas_call
# ---------------------------------------------------------------------------
def bert_forward(weights, input_ids, token_type_ids=None,
                 one_zero_attention_mask=None):
    cfg = CFG
    B, S = input_ids.shape
    V = cfg['vocab_size']
    T = cfg['type_vocab_size']
    nh = cfg['num_heads']
    hd = cfg['head_size']
    L = cfg['num_layers']
    eps = cfg['layer_norm_epsilon']

    if token_type_ids is None:
        token_type_ids = jnp.zeros_like(input_ids)

    # ids pre-offset into the concatenated [token | type | position] table.
    tok_ids = input_ids.astype(jnp.int32).reshape(B, S, 1)
    typ_ids = (token_type_ids.astype(jnp.int32) + V).reshape(B, S, 1)

    # Additive key-pad mask, (B, 1, S): -10000 for padding keys, 0 otherwise
    # (same semantics as make_additive_attention_mask). No (N,N) mask is ever
    # materialized; per-batch attention comes from the grid.
    if one_zero_attention_mask is None:
        pad_add = jnp.zeros((B, 1, S), jnp.float32)
    else:
        pad_add = ((1.0 - one_zero_attention_mask.astype(jnp.float32))
                   * -10000.0).reshape(B, 1, S)

    kernel = functools.partial(bert_kernel, num_layers=L, num_heads=nh,
                               head_size=hd, eps=eps, pos_offset=V + T)

    in_specs = [
        pl.BlockSpec((None, S, 1), lambda b: (b, 0, 0)),   # token ids
        pl.BlockSpec((None, S, 1), lambda b: (b, 0, 0)),   # type ids (offset)
        pl.BlockSpec((None, 1, S), lambda b: (b, 0, 0)),   # additive pad mask
    ] + [_VMEM] * len(weights)

    logits = pl.pallas_call(
        kernel,
        out_shape=jax.ShapeDtypeStruct((B, S, V), jnp.float32),
        grid=(B,),
        in_specs=in_specs,
        out_specs=pl.BlockSpec((None, S, V), lambda b: (b, 0, 0)),
        compiler_params=pltpu.CompilerParams(
            dimension_semantics=("parallel",),        # 2 TCs on v7x; no-op v5e/v6e
            vmem_limit_bytes=_vmem_limit_bytes()),
    )(tok_ids, typ_ids, pad_add, *weights)

    return logits


if __name__ == "__main__":
    key = jax.random.PRNGKey(0)
    pkey, ikey, tkey = jax.random.split(key, 3)

    params = init_params(pkey, CFG)
    weights = prepare_weights(params)          # one-time prep (stack/T/bf16)

    B, S = 2, 8
    input_ids = jax.random.randint(ikey, (B, S), 0, CFG['vocab_size'],
                                   dtype=jnp.int32)
    token_type_ids = jax.random.randint(tkey, (B, S), 0,
                                        CFG['type_vocab_size'], dtype=jnp.int32)
    # Last two tokens of each sequence are padding.
    one_zero_attention_mask = jnp.ones((B, S), jnp.float32).at[:, -2:].set(0.0)

    logits = bert_forward(weights, input_ids, token_type_ids,
                          one_zero_attention_mask)
    logits = jax.block_until_ready(logits)

    assert logits.shape == (B, S, CFG['vocab_size']), logits.shape
    assert bool(jnp.all(jnp.isfinite(logits)))
    print("KERNEL_OK")
</pallas_src>

<mosaic_0001>
module attributes {stable_mosaic.version = 11 : i64} {
  func.func @bert_kernel(%arg0: i32, %arg1: memref<1x8x1xi32, #tpu.memory_space<vmem>>, %arg2: memref<1x8x1xi32, #tpu.memory_space<vmem>>, %arg3: memref<1x1x8xf32, #tpu.memory_space<vmem>>, %arg4: memref<146x32xbf16, #tpu.memory_space<vmem>>, %arg5: memref<1x32xf32, #tpu.memory_space<vmem>>, %arg6: memref<1x32xf32, #tpu.memory_space<vmem>>, %arg7: memref<2x32x32xbf16, #tpu.memory_space<vmem>>, %arg8: memref<2x32x1xf32, #tpu.memory_space<vmem>>, %arg9: memref<2x32x32xbf16, #tpu.memory_space<vmem>>, %arg10: memref<2x32x1xf32, #tpu.memory_space<vmem>>, %arg11: memref<2x32x32xbf16, #tpu.memory_space<vmem>>, %arg12: memref<2x32x1xf32, #tpu.memory_space<vmem>>, %arg13: memref<2x32x32xbf16, #tpu.memory_space<vmem>>, %arg14: memref<2x1x32xf32, #tpu.memory_space<vmem>>, %arg15: memref<2x1x32xf32, #tpu.memory_space<vmem>>, %arg16: memref<2x1x32xf32, #tpu.memory_space<vmem>>, %arg17: memref<2x32x64xbf16, #tpu.memory_space<vmem>>, %arg18: memref<2x1x64xf32, #tpu.memory_space<vmem>>, %arg19: memref<2x64x32xbf16, #tpu.memory_space<vmem>>, %arg20: memref<2x1x32xf32, #tpu.memory_space<vmem>>, %arg21: memref<2x1x32xf32, #tpu.memory_space<vmem>>, %arg22: memref<2x1x32xf32, #tpu.memory_space<vmem>>, %arg23: memref<32x32xbf16, #tpu.memory_space<vmem>>, %arg24: memref<1x32xf32, #tpu.memory_space<vmem>>, %arg25: memref<1x32xf32, #tpu.memory_space<vmem>>, %arg26: memref<1x32xf32, #tpu.memory_space<vmem>>, %arg27: memref<32x128xbf16, #tpu.memory_space<vmem>>, %arg28: memref<1x128xf32, #tpu.memory_space<vmem>>, %arg29: memref<1x8x128xf32, #tpu.memory_space<vmem>>) attributes {dimension_semantics = [#tpu.dimension_semantics<parallel>], iteration_bounds = array<i64: 2>, scalar_prefetch = 0 : i64, scratch_operands = 0 : i64, tpu.core_type = #tpu.core_type<tc>, window_params = [{transform_indices = @transform_0, window_bounds = array<i64: 1, 8, 1>}, {transform_indices = @transform_1, window_bounds = array<i64: 1, 8, 1>}, {transform_indices = @transform_2, window_bounds = array<i64: 1, 1, 8>}, {pipeline_mode = #tpu.pipeline_mode<synchronous>, transform_indices = @transform_3, window_bounds = array<i64: 146, 32>}, {pipeline_mode = #tpu.pipeline_mode<synchronous>, transform_indices = @transform_4, window_bounds = array<i64: 1, 32>}, {pipeline_mode = #tpu.pipeline_mode<synchronous>, transform_indices = @transform_5, window_bounds = array<i64: 1, 32>}, {pipeline_mode = #tpu.pipeline_mode<synchronous>, transform_indices = @transform_6, window_bounds = array<i64: 2, 32, 32>}, {pipeline_mode = #tpu.pipeline_mode<synchronous>, transform_indices = @transform_7, window_bounds = array<i64: 2, 32, 1>}, {pipeline_mode = #tpu.pipeline_mode<synchronous>, transform_indices = @transform_8, window_bounds = array<i64: 2, 32, 32>}, {pipeline_mode = #tpu.pipeline_mode<synchronous>, transform_indices = @transform_9, window_bounds = array<i64: 2, 32, 1>}, {pipeline_mode = #tpu.pipeline_mode<synchronous>, transform_indices = @transform_10, window_bounds = array<i64: 2, 32, 32>}, {pipeline_mode = #tpu.pipeline_mode<synchronous>, transform_indices = @transform_11, window_bounds = array<i64: 2, 32, 1>}, {pipeline_mode = #tpu.pipeline_mode<synchronous>, transform_indices = @transform_12, window_bounds = array<i64: 2, 32, 32>}, {pipeline_mode = #tpu.pipeline_mode<synchronous>, transform_indices = @transform_13, window_bounds = array<i64: 2, 1, 32>}, {pipeline_mode = #tpu.pipeline_mode<synchronous>, transform_indices = @transform_14, window_bounds = array<i64: 2, 1, 32>}, {pipeline_mode = #tpu.pipeline_mode<synchronous>, transform_indices = @transform_15, window_bounds = array<i64: 2, 1, 32>}, {pipeline_mode = #tpu.pipeline_mode<synchronous>, transform_indices = @transform_16, window_bounds = array<i64: 2, 32, 64>}, {pipeline_mode = #tpu.pipeline_mode<synchronous>, transform_indices = @transform_17, window_bounds = array<i64: 2, 1, 64>}, {pipeline_mode = #tpu.pipeline_mode<synchronous>, transform_indices = @transform_18, window_bounds = array<i64: 2, 64, 32>}, {pipeline_mode = #tpu.pipeline_mode<synchronous>, transform_indices = @transform_19, window_bounds = array<i64: 2, 1, 32>}, {pipeline_mode = #tpu.pipeline_mode<synchronous>, transform_indices = @transform_20, window_bounds = array<i64: 2, 1, 32>}, {pipeline_mode = #tpu.pipeline_mode<synchronous>, transform_indices = @transform_21, window_bounds = array<i64: 2, 1, 32>}, {pipeline_mode = #tpu.pipeline_mode<synchronous>, transform_indices = @transform_22, window_bounds = array<i64: 32, 32>}, {pipeline_mode = #tpu.pipeline_mode<synchronous>, transform_indices = @transform_23, window_bounds = array<i64: 1, 32>}, {pipeline_mode = #tpu.pipeline_mode<synchronous>, transform_indices = @transform_24, window_bounds = array<i64: 1, 32>}, {pipeline_mode = #tpu.pipeline_mode<synchronous>, transform_indices = @transform_25, window_bounds = array<i64: 1, 32>}, {pipeline_mode = #tpu.pipeline_mode<synchronous>, transform_indices = @transform_26, window_bounds = array<i64: 32, 128>}, {pipeline_mode = #tpu.pipeline_mode<synchronous>, transform_indices = @transform_27, window_bounds = array<i64: 1, 128>}, {transform_indices = @transform_28, window_bounds = array<i64: 1, 8, 128>}]} {
    %0 = tpu.iota {dimensions = array<i32: 1>} : vector<8x146xi32>
    %1 = tpu.iota {dimensions = array<i32: 0>} : vector<8x146xi32>
    %c0 = arith.constant 0 : index
    %c0_0 = arith.constant 0 : index
    %c0_1 = arith.constant 0 : index
    %2 = vector.load %arg1[%c0, %c0_0, %c0_1] : memref<1x8x1xi32, #tpu.memory_space<vmem>>, vector<1x8x1xi32>
    %3 = vector.shape_cast %2 : vector<1x8x1xi32> to vector<8x1xi32>
    %4 = vector.broadcast %3 : vector<8x1xi32> to vector<8x146xi32>
    %5 = arith.cmpi eq, %4, %0 : vector<8x146xi32>
    %c0_2 = arith.constant 0 : index
    %c0_3 = arith.constant 0 : index
    %c0_4 = arith.constant 0 : index
    %6 = vector.load %arg2[%c0_2, %c0_3, %c0_4] : memref<1x8x1xi32, #tpu.memory_space<vmem>>, vector<1x8x1xi32>
    %7 = vector.shape_cast %6 : vector<1x8x1xi32> to vector<8x1xi32>
    %8 = vector.broadcast %7 : vector<8x1xi32> to vector<8x146xi32>
    %9 = arith.cmpi eq, %8, %0 : vector<8x146xi32>
    %10 = arith.ori %5, %9 : vector<8x146xi1>
    %c130_i32 = arith.constant 130 : i32
    %11 = vector.broadcast %c130_i32 : i32 to vector<8x146xi32>
    %12 = arith.addi %1, %11 : vector<8x146xi32>
    %13 = arith.cmpi eq, %0, %12 : vector<8x146xi32>
    %14 = arith.ori %10, %13 : vector<8x146xi1>
    %15 = arith.extui %14 : vector<8x146xi1> to vector<8x146xi32>
    %16 = arith.sitofp %15 : vector<8x146xi32> to vector<8x146xf32>
    %17 = arith.truncf %16 : vector<8x146xf32> to vector<8x146xbf16>
    %c0_5 = arith.constant 0 : index
    %c0_6 = arith.constant 0 : index
    %18 = vector.load %arg4[%c0_5, %c0_6] : memref<146x32xbf16, #tpu.memory_space<vmem>>, vector<146x32xbf16>
    %cst = arith.constant dense<0.000000e+00> : vector<8x32xf32>
    %19 = tpu.matmul %17, %18, %cst {dimension_numbers = #tpu.dot_dimension_numbers<[1], [0], [0], [1], [0, 0, 1, 1], [], []>} : vector<8x146xbf16>, vector<146x32xbf16>, vector<8x32xf32> -> vector<8x32xf32>
    %c0_7 = arith.constant 0 : index
    %c0_8 = arith.constant 0 : index
    %20 = vector.load %arg5[%c0_7, %c0_8] : memref<1x32xf32, #tpu.memory_space<vmem>>, vector<1x32xf32>
    %c0_9 = arith.constant 0 : index
    %c0_10 = arith.constant 0 : index
    %21 = vector.load %arg6[%c0_9, %c0_10] : memref<1x32xf32, #tpu.memory_space<vmem>>, vector<1x32xf32>
    %cst_11 = arith.constant dense<0.000000e+00> : vector<8xf32>
    %22 = vector.multi_reduction <add>, %19, %cst_11 [1] : vector<8x32xf32> to vector<8xf32>
    %23 = vector.shape_cast %22 : vector<8xf32> to vector<8x1xf32>
    %cst_12 = arith.constant 3.200000e+01 : f32
    %24 = vector.broadcast %cst_12 : f32 to vector<8x1xf32>
    %25 = arith.divf %23, %24 : vector<8x1xf32>
    %26 = vector.broadcast %25 : vector<8x1xf32> to vector<8x32xf32>
    %27 = arith.subf %19, %26 : vector<8x32xf32>
    %28 = arith.mulf %27, %27 : vector<8x32xf32>
    %cst_13 = arith.constant dense<0.000000e+00> : vector<8xf32>
    %29 = vector.multi_reduction <add>, %28, %cst_13 [1] : vector<8x32xf32> to vector<8xf32>
    %30 = vector.shape_cast %29 : vector<8xf32> to vector<8x1xf32>
    %cst_14 = arith.constant 3.200000e+01 : f32
    %31 = vector.broadcast %cst_14 : f32 to vector<8x1xf32>
    %32 = arith.divf %30, %31 : vector<8x1xf32>
    %33 = vector.broadcast %25 : vector<8x1xf32> to vector<8x32xf32>
    %34 = arith.subf %19, %33 : vector<8x32xf32>
    %cst_15 = arith.constant 9.99999996E-13 : f32
    %35 = vector.broadcast %cst_15 : f32 to vector<8x1xf32>
    %36 = arith.addf %32, %35 : vector<8x1xf32>
    %37 = math.rsqrt %36 : vector<8x1xf32>
    %38 = vector.broadcast %37 : vector<8x1xf32> to vector<8x32xf32>
    %39 = arith.mulf %34, %38 : vector<8x32xf32>
    %40 = vector.broadcast %20 : vector<1x32xf32> to vector<8x32xf32>
    %41 = arith.mulf %39, %40 : vector<8x32xf32>
    %42 = vector.broadcast %21 : vector<1x32xf32> to vector<8x32xf32>
    %43 = arith.addf %41, %42 : vector<8x32xf32>
    %c0_16 = arith.constant 0 : index
    %c0_17 = arith.constant 0 : index
    %c0_18 = arith.constant 0 : index
    %44 = vector.load %arg3[%c0_16, %c0_17, %c0_18] : memref<1x1x8xf32, #tpu.memory_space<vmem>>, vector<1x1x8xf32>
    %45 = vector.shape_cast %44 : vector<1x1x8xf32> to vector<1x8xf32>
    %46 = vector.shape_cast %45 : vector<1x8xf32> to vector<1x1x8xf32>
    %47 = arith.truncf %43 : vector<8x32xf32> to vector<8x32xbf16>
    %c0_19 = arith.constant 0 : index
    %c0_20 = arith.constant 0 : index
    %c0_21 = arith.constant 0 : index
    %48 = vector.load %arg7[%c0_19, %c0_20, %c0_21] : memref<2x32x32xbf16, #tpu.memory_space<vmem>>, vector<1x32x32xbf16>
    %49 = vector.shape_cast %48 : vector<1x32x32xbf16> to vector<32x32xbf16>
    "tpu.trace_start"() <{level = 10 : i32, message = "dh,sh->ds"}> : () -> ()
    %cst_22 = arith.constant dense<0.000000e+00> : vector<32x8xf32>
    %50 = tpu.matmul %49, %47, %cst_22 {dimension_numbers = #tpu.dot_dimension_numbers<[1], [1], [0], [0], [0, 0, 1, 0], [], []>} : vector<32x32xbf16>, vector<8x32xbf16>, vector<32x8xf32> -> vector<32x8xf32>
    "tpu.trace_stop"() : () -> ()
    %c0_23 = arith.constant 0 : index
    %c0_24 = arith.constant 0 : index
    %c0_25 = arith.constant 0 : index
    %51 = vector.load %arg8[%c0_23, %c0_24, %c0_25] : memref<2x32x1xf32, #tpu.memory_space<vmem>>, vector<1x32x1xf32>
    %52 = vector.shape_cast %51 : vector<1x32x1xf32> to vector<32x1xf32>
    %53 = vector.broadcast %52 : vector<32x1xf32> to vector<32x8xf32>
    %54 = arith.addf %50, %53 : vector<32x8xf32>
    %c0_26 = arith.constant 0 : index
    %c0_27 = arith.constant 0 : index
    %c0_28 = arith.constant 0 : index
    %55 = vector.load %arg9[%c0_26, %c0_27, %c0_28] : memref<2x32x32xbf16, #tpu.memory_space<vmem>>, vector<1x32x32xbf16>
    %56 = vector.shape_cast %55 : vector<1x32x32xbf16> to vector<32x32xbf16>
    "tpu.trace_start"() <{level = 10 : i32, message = "dh,sh->ds"}> : () -> ()
    %cst_29 = arith.constant dense<0.000000e+00> : vector<32x8xf32>
    %57 = tpu.matmul %56, %47, %cst_29 {dimension_numbers = #tpu.dot_dimension_numbers<[1], [1], [0], [0], [0, 0, 1, 0], [], []>} : vector<32x32xbf16>, vector<8x32xbf16>, vector<32x8xf32> -> vector<32x8xf32>
    "tpu.trace_stop"() : () -> ()
    %c0_30 = arith.constant 0 : index
    %c0_31 = arith.constant 0 : index
    %c0_32 = arith.constant 0 : index
    %58 = vector.load %arg10[%c0_30, %c0_31, %c0_32] : memref<2x32x1xf32, #tpu.memory_space<vmem>>, vector<1x32x1xf32>
    %59 = vector.shape_cast %58 : vector<1x32x1xf32> to vector<32x1xf32>
    %60 = vector.broadcast %59 : vector<32x1xf32> to vector<32x8xf32>
    %61 = arith.addf %57, %60 : vector<32x8xf32>
    %c0_33 = arith.constant 0 : index
    %c0_34 = arith.constant 0 : index
    %c0_35 = arith.constant 0 : index
    %62 = vector.load %arg11[%c0_33, %c0_34, %c0_35] : memref<2x32x32xbf16, #tpu.memory_space<vmem>>, vector<1x32x32xbf16>
    %63 = vector.shape_cast %62 : vector<1x32x32xbf16> to vector<32x32xbf16>
    "tpu.trace_start"() <{level = 10 : i32, message = "dh,sh->ds"}> : () -> ()
    %cst_36 = arith.constant dense<0.000000e+00> : vector<32x8xf32>
    %64 = tpu.matmul %63, %47, %cst_36 {dimension_numbers = #tpu.dot_dimension_numbers<[1], [1], [0], [0], [0, 0, 1, 0], [], []>} : vector<32x32xbf16>, vector<8x32xbf16>, vector<32x8xf32> -> vector<32x8xf32>
    "tpu.trace_stop"() : () -> ()
    %c0_37 = arith.constant 0 : index
    %c0_38 = arith.constant 0 : index
    %c0_39 = arith.constant 0 : index
    %65 = vector.load %arg12[%c0_37, %c0_38, %c0_39] : memref<2x32x1xf32, #tpu.memory_space<vmem>>, vector<1x32x1xf32>
    %66 = vector.shape_cast %65 : vector<1x32x1xf32> to vector<32x1xf32>
    %67 = vector.broadcast %66 : vector<32x1xf32> to vector<32x8xf32>
    %68 = arith.addf %64, %67 : vector<32x8xf32>
    %69 = vector.shape_cast %54 : vector<32x8xf32> to vector<4x8x8xf32>
    %70 = arith.truncf %69 : vector<4x8x8xf32> to vector<4x8x8xbf16>
    %71 = vector.shape_cast %61 : vector<32x8xf32> to vector<4x8x8xf32>
    %72 = arith.truncf %71 : vector<4x8x8xf32> to vector<4x8x8xbf16>
    %73 = vector.shape_cast %68 : vector<32x8xf32> to vector<4x8x8xf32>
    %74 = arith.truncf %73 : vector<4x8x8xf32> to vector<4x8x8xbf16>
    "tpu.trace_start"() <{level = 10 : i32, message = "hdq,hdk->hqk"}> : () -> ()
    %cst_40 = arith.constant dense<0.000000e+00> : vector<4x8x8xf32>
    %75 = tpu.matmul %70, %72, %cst_40 {dimension_numbers = #tpu.dot_dimension_numbers<[1], [1], [2], [2], [0, 0, 0, 2, 1, 2], [0], [0]>} : vector<4x8x8xbf16>, vector<4x8x8xbf16>, vector<4x8x8xf32> -> vector<4x8x8xf32>
    "tpu.trace_stop"() : () -> ()
    %cst_41 = arith.constant 0.353553385 : f32
    %76 = vector.broadcast %cst_41 : f32 to vector<4x8x8xf32>
    %77 = arith.mulf %75, %76 : vector<4x8x8xf32>
    %78 = vector.broadcast %46 : vector<1x1x8xf32> to vector<4x8x8xf32>
    %79 = arith.addf %77, %78 : vector<4x8x8xf32>
    %cst_42 = arith.constant dense<0xFF800000> : vector<4x8xf32>
    %80 = vector.multi_reduction <maximumf>, %79, %cst_42 [2] : vector<4x8x8xf32> to vector<4x8xf32>
    %81 = vector.shape_cast %80 : vector<4x8xf32> to vector<4x8x1xf32>
    %82 = vector.broadcast %81 : vector<4x8x1xf32> to vector<4x8x8xf32>
    %83 = arith.subf %79, %82 : vector<4x8x8xf32>
    %84 = math.exp %83 : vector<4x8x8xf32>
    %cst_43 = arith.constant dense<0.000000e+00> : vector<4x8xf32>
    %85 = vector.multi_reduction <add>, %84, %cst_43 [2] : vector<4x8x8xf32> to vector<4x8xf32>
    %86 = vector.shape_cast %85 : vector<4x8xf32> to vector<4x8x1xf32>
    %87 = tpu.reciprocal %86 {approx = true} : vector<4x8x1xf32> -> vector<4x8x1xf32>
    %88 = vector.broadcast %87 : vector<4x8x1xf32> to vector<4x8x8xf32>
    %89 = arith.mulf %84, %88 : vector<4x8x8xf32>
    %90 = arith.truncf %89 : vector<4x8x8xf32> to vector<4x8x8xbf16>
    "tpu.trace_start"() <{level = 10 : i32, message = "hdk,hqk->hdq"}> : () -> ()
    %cst_44 = arith.constant dense<0.000000e+00> : vector<4x8x8xf32>
    %91 = tpu.matmul %74, %90, %cst_44 {dimension_numbers = #tpu.dot_dimension_numbers<[2], [2], [1], [1], [0, 0, 0, 1, 1, 1], [0], [0]>} : vector<4x8x8xbf16>, vector<4x8x8xbf16>, vector<4x8x8xf32> -> vector<4x8x8xf32>
    "tpu.trace_stop"() : () -> ()
    %92 = vector.shape_cast %91 : vector<4x8x8xf32> to vector<32x8xf32>
    %93 = arith.truncf %92 : vector<32x8xf32> to vector<32x8xbf16>
    %c0_45 = arith.constant 0 : index
    %c0_46 = arith.constant 0 : index
    %c0_47 = arith.constant 0 : index
    %94 = vector.load %arg13[%c0_45, %c0_46, %c0_47] : memref<2x32x32xbf16, #tpu.memory_space<vmem>>, vector<1x32x32xbf16>
    %95 = vector.shape_cast %94 : vector<1x32x32xbf16> to vector<32x32xbf16>
    "tpu.trace_start"() <{level = 10 : i32, message = "ds,do->so"}> : () -> ()
    %cst_48 = arith.constant dense<0.000000e+00> : vector<8x32xf32>
    %96 = tpu.matmul %93, %95, %cst_48 {dimension_numbers = #tpu.dot_dimension_numbers<[0], [0], [1], [1], [0, 1, 1, 1], [], []>} : vector<32x8xbf16>, vector<32x32xbf16>, vector<8x32xf32> -> vector<8x32xf32>
    "tpu.trace_stop"() : () -> ()
    %c0_49 = arith.constant 0 : index
    %c0_50 = arith.constant 0 : index
    %c0_51 = arith.constant 0 : index
    %97 = vector.load %arg14[%c0_49, %c0_50, %c0_51] : memref<2x1x32xf32, #tpu.memory_space<vmem>>, vector<1x1x32xf32>
    %98 = vector.shape_cast %97 : vector<1x1x32xf32> to vector<1x32xf32>
    %99 = vector.broadcast %98 : vector<1x32xf32> to vector<8x32xf32>
    %100 = arith.addf %96, %99 : vector<8x32xf32>
    %101 = arith.addf %100, %43 : vector<8x32xf32>
    %c0_52 = arith.constant 0 : index
    %c0_53 = arith.constant 0 : index
    %c0_54 = arith.constant 0 : index
    %102 = vector.load %arg15[%c0_52, %c0_53, %c0_54] : memref<2x1x32xf32, #tpu.memory_space<vmem>>, vector<1x1x32xf32>
    %103 = vector.shape_cast %102 : vector<1x1x32xf32> to vector<1x32xf32>
    %c0_55 = arith.constant 0 : index
    %c0_56 = arith.constant 0 : index
    %c0_57 = arith.constant 0 : index
    %104 = vector.load %arg16[%c0_55, %c0_56, %c0_57] : memref<2x1x32xf32, #tpu.memory_space<vmem>>, vector<1x1x32xf32>
    %105 = vector.shape_cast %104 : vector<1x1x32xf32> to vector<1x32xf32>
    %cst_58 = arith.constant dense<0.000000e+00> : vector<8xf32>
    %106 = vector.multi_reduction <add>, %101, %cst_58 [1] : vector<8x32xf32> to vector<8xf32>
    %107 = vector.shape_cast %106 : vector<8xf32> to vector<8x1xf32>
    %cst_59 = arith.constant 3.200000e+01 : f32
    %108 = vector.broadcast %cst_59 : f32 to vector<8x1xf32>
    %109 = arith.divf %107, %108 : vector<8x1xf32>
    %110 = vector.broadcast %109 : vector<8x1xf32> to vector<8x32xf32>
    %111 = arith.subf %101, %110 : vector<8x32xf32>
    %112 = arith.mulf %111, %111 : vector<8x32xf32>
    %cst_60 = arith.constant dense<0.000000e+00> : vector<8xf32>
    %113 = vector.multi_reduction <add>, %112, %cst_60 [1] : vector<8x32xf32> to vector<8xf32>
    %114 = vector.shape_cast %113 : vector<8xf32> to vector<8x1xf32>
    %cst_61 = arith.constant 3.200000e+01 : f32
    %115 = vector.broadcast %cst_61 : f32 to vector<8x1xf32>
    %116 = arith.divf %114, %115 : vector<8x1xf32>
    %117 = vector.broadcast %109 : vector<8x1xf32> to vector<8x32xf32>
    %118 = arith.subf %101, %117 : vector<8x32xf32>
    %cst_62 = arith.constant 9.99999996E-13 : f32
    %119 = vector.broadcast %cst_62 : f32 to vector<8x1xf32>
    %120 = arith.addf %116, %119 : vector<8x1xf32>
    %121 = math.rsqrt %120 : vector<8x1xf32>
    %122 = vector.broadcast %121 : vector<8x1xf32> to vector<8x32xf32>
    %123 = arith.mulf %118, %122 : vector<8x32xf32>
    %124 = vector.broadcast %103 : vector<1x32xf32> to vector<8x32xf32>
    %125 = arith.mulf %123, %124 : vector<8x32xf32>
    %126 = vector.broadcast %105 : vector<1x32xf32> to vector<8x32xf32>
    %127 = arith.addf %125, %126 : vector<8x32xf32>
    %128 = arith.truncf %127 : vector<8x32xf32> to vector<8x32xbf16>
    %c0_63 = arith.constant 0 : index
    %c0_64 = arith.constant 0 : index
    %c0_65 = arith.constant 0 : index
    %129 = vector.load %arg17[%c0_63, %c0_64, %c0_65] : memref<2x32x64xbf16, #tpu.memory_space<vmem>>, vector<1x32x64xbf16>
    %130 = vector.shape_cast %129 : vector<1x32x64xbf16> to vector<32x64xbf16>
    %cst_66 = arith.constant dense<0.000000e+00> : vector<8x64xf32>
    %131 = tpu.matmul %128, %130, %cst_66 {dimension_numbers = #tpu.dot_dimension_numbers<[1], [0], [0], [1], [0, 0, 1, 1], [], []>} : vector<8x32xbf16>, vector<32x64xbf16>, vector<8x64xf32> -> vector<8x64xf32>
    %c0_67 = arith.constant 0 : index
    %c0_68 = arith.constant 0 : index
    %c0_69 = arith.constant 0 : index
    %132 = vector.load %arg18[%c0_67, %c0_68, %c0_69] : memref<2x1x64xf32, #tpu.memory_space<vmem>>, vector<1x1x64xf32>
    %133 = vector.shape_cast %132 : vector<1x1x64xf32> to vector<1x64xf32>
    %134 = vector.broadcast %133 : vector<1x64xf32> to vector<8x64xf32>
    %135 = arith.addf %131, %134 : vector<8x64xf32>
    %cst_70 = arith.constant 5.000000e-01 : f32
    %136 = vector.broadcast %cst_70 : f32 to vector<8x64xf32>
    %137 = arith.mulf %136, %135 : vector<8x64xf32>
    %cst_71 = arith.constant 0.707106769 : f32
    %138 = vector.broadcast %cst_71 : f32 to vector<8x64xf32>
    %139 = arith.mulf %135, %138 : vector<8x64xf32>
    %140 = math.erf %139 : vector<8x64xf32>
    %cst_72 = arith.constant 1.000000e+00 : f32
    %141 = vector.broadcast %cst_72 : f32 to vector<8x64xf32>
    %142 = arith.addf %141, %140 : vector<8x64xf32>
    %143 = arith.mulf %137, %142 : vector<8x64xf32>
    %144 = arith.truncf %143 : vector<8x64xf32> to vector<8x64xbf16>
    %c0_73 = arith.constant 0 : index
    %c0_74 = arith.constant 0 : index
    %c0_75 = arith.constant 0 : index
    %145 = vector.load %arg19[%c0_73, %c0_74, %c0_75] : memref<2x64x32xbf16, #tpu.memory_space<vmem>>, vector<1x64x32xbf16>
    %146 = vector.shape_cast %145 : vector<1x64x32xbf16> to vector<64x32xbf16>
    %cst_76 = arith.constant dense<0.000000e+00> : vector<8x32xf32>
    %147 = tpu.matmul %144, %146, %cst_76 {dimension_numbers = #tpu.dot_dimension_numbers<[1], [0], [0], [1], [0, 0, 1, 1], [], []>} : vector<8x64xbf16>, vector<64x32xbf16>, vector<8x32xf32> -> vector<8x32xf32>
    %c0_77 = arith.constant 0 : index
    %c0_78 = arith.constant 0 : index
    %c0_79 = arith.constant 0 : index
    %148 = vector.load %arg20[%c0_77, %c0_78, %c0_79] : memref<2x1x32xf32, #tpu.memory_space<vmem>>, vector<1x1x32xf32>
    %149 = vector.shape_cast %148 : vector<1x1x32xf32> to vector<1x32xf32>
    %150 = vector.broadcast %149 : vector<1x32xf32> to vector<8x32xf32>
    %151 = arith.addf %147, %150 : vector<8x32xf32>
    %152 = arith.addf %151, %127 : vector<8x32xf32>
    %c0_80 = arith.constant 0 : index
    %c0_81 = arith.constant 0 : index
    %c0_82 = arith.constant 0 : index
    %153 = vector.load %arg21[%c0_80, %c0_81, %c0_82] : memref<2x1x32xf32, #tpu.memory_space<vmem>>, vector<1x1x32xf32>
    %154 = vector.shape_cast %153 : vector<1x1x32xf32> to vector<1x32xf32>
    %c0_83 = arith.constant 0 : index
    %c0_84 = arith.constant 0 : index
    %c0_85 = arith.constant 0 : index
    %155 = vector.load %arg22[%c0_83, %c0_84, %c0_85] : memref<2x1x32xf32, #tpu.memory_space<vmem>>, vector<1x1x32xf32>
    %156 = vector.shape_cast %155 : vector<1x1x32xf32> to vector<1x32xf32>
    %cst_86 = arith.constant dense<0.000000e+00> : vector<8xf32>
    %157 = vector.multi_reduction <add>, %152, %cst_86 [1] : vector<8x32xf32> to vector<8xf32>
    %158 = vector.shape_cast %157 : vector<8xf32> to vector<8x1xf32>
    %cst_87 = arith.constant 3.200000e+01 : f32
    %159 = vector.broadcast %cst_87 : f32 to vector<8x1xf32>
    %160 = arith.divf %158, %159 : vector<8x1xf32>
    %161 = vector.broadcast %160 : vector<8x1xf32> to vector<8x32xf32>
    %162 = arith.subf %152, %161 : vector<8x32xf32>
    %163 = arith.mulf %162, %162 : vector<8x32xf32>
    %cst_88 = arith.constant dense<0.000000e+00> : vector<8xf32>
    %164 = vector.multi_reduction <add>, %163, %cst_88 [1] : vector<8x32xf32> to vector<8xf32>
    %165 = vector.shape_cast %164 : vector<8xf32> to vector<8x1xf32>
    %cst_89 = arith.constant 3.200000e+01 : f32
    %166 = vector.broadcast %cst_89 : f32 to vector<8x1xf32>
    %167 = arith.divf %165, %166 : vector<8x1xf32>
    %168 = vector.broadcast %160 : vector<8x1xf32> to vector<8x32xf32>
    %169 = arith.subf %152, %168 : vector<8x32xf32>
    %cst_90 = arith.constant 9.99999996E-13 : f32
    %170 = vector.broadcast %cst_90 : f32 to vector<8x1xf32>
    %171 = arith.addf %167, %170 : vector<8x1xf32>
    %172 = math.rsqrt %171 : vector<8x1xf32>
    %173 = vector.broadcast %172 : vector<8x1xf32> to vector<8x32xf32>
    %174 = arith.mulf %169, %173 : vector<8x32xf32>
    %175 = vector.broadcast %154 : vector<1x32xf32> to vector<8x32xf32>
    %176 = arith.mulf %174, %175 : vector<8x32xf32>
    %177 = vector.broadcast %156 : vector<1x32xf32> to vector<8x32xf32>
    %178 = arith.addf %176, %177 : vector<8x32xf32>
    %179 = arith.truncf %178 : vector<8x32xf32> to vector<8x32xbf16>
    %c1 = arith.constant 1 : index
    %c0_91 = arith.constant 0 : index
    %c0_92 = arith.constant 0 : index
    %180 = vector.load %arg7[%c1, %c0_91, %c0_92] : memref<2x32x32xbf16, #tpu.memory_space<vmem>>, vector<1x32x32xbf16>
    %181 = vector.shape_cast %180 : vector<1x32x32xbf16> to vector<32x32xbf16>
    "tpu.trace_start"() <{level = 10 : i32, message = "dh,sh->ds"}> : () -> ()
    %cst_93 = arith.constant dense<0.000000e+00> : vector<32x8xf32>
    %182 = tpu.matmul %181, %179, %cst_93 {dimension_numbers = #tpu.dot_dimension_numbers<[1], [1], [0], [0], [0, 0, 1, 0], [], []>} : vector<32x32xbf16>, vector<8x32xbf16>, vector<32x8xf32> -> vector<32x8xf32>
    "tpu.trace_stop"() : () -> ()
    %c1_94 = arith.constant 1 : index
    %c0_95 = arith.constant 0 : index
    %c0_96 = arith.constant 0 : index
    %183 = vector.load %arg8[%c1_94, %c0_95, %c0_96] : memref<2x32x1xf32, #tpu.memory_space<vmem>>, vector<1x32x1xf32>
    %184 = vector.shape_cast %183 : vector<1x32x1xf32> to vector<32x1xf32>
    %185 = vector.broadcast %184 : vector<32x1xf32> to vector<32x8xf32>
    %186 = arith.addf %182, %185 : vector<32x8xf32>
    %c1_97 = arith.constant 1 : index
    %c0_98 = arith.constant 0 : index
    %c0_99 = arith.constant 0 : index
    %187 = vector.load %arg9[%c1_97, %c0_98, %c0_99] : memref<2x32x32xbf16, #tpu.memory_space<vmem>>, vector<1x32x32xbf16>
    %188 = vector.shape_cast %187 : vector<1x32x32xbf16> to vector<32x32xbf16>
    "tpu.trace_start"() <{level = 10 : i32, message = "dh,sh->ds"}> : () -> ()
    %cst_100 = arith.constant dense<0.000000e+00> : vector<32x8xf32>
    %189 = tpu.matmul %188, %179, %cst_100 {dimension_numbers = #tpu.dot_dimension_numbers<[1], [1], [0], [0], [0, 0, 1, 0], [], []>} : vector<32x32xbf16>, vector<8x32xbf16>, vector<32x8xf32> -> vector<32x8xf32>
    "tpu.trace_stop"() : () -> ()
    %c1_101 = arith.constant 1 : index
    %c0_102 = arith.constant 0 : index
    %c0_103 = arith.constant 0 : index
    %190 = vector.load %arg10[%c1_101, %c0_102, %c0_103] : memref<2x32x1xf32, #tpu.memory_space<vmem>>, vector<1x32x1xf32>
    %191 = vector.shape_cast %190 : vector<1x32x1xf32> to vector<32x1xf32>
    %192 = vector.broadcast %191 : vector<32x1xf32> to vector<32x8xf32>
    %193 = arith.addf %189, %192 : vector<32x8xf32>
    %c1_104 = arith.constant 1 : index
    %c0_105 = arith.constant 0 : index
    %c0_106 = arith.constant 0 : index
    %194 = vector.load %arg11[%c1_104, %c0_105, %c0_106] : memref<2x32x32xbf16, #tpu.memory_space<vmem>>, vector<1x32x32xbf16>
    %195 = vector.shape_cast %194 : vector<1x32x32xbf16> to vector<32x32xbf16>
    "tpu.trace_start"() <{level = 10 : i32, message = "dh,sh->ds"}> : () -> ()
    %cst_107 = arith.constant dense<0.000000e+00> : vector<32x8xf32>
    %196 = tpu.matmul %195, %179, %cst_107 {dimension_numbers = #tpu.dot_dimension_numbers<[1], [1], [0], [0], [0, 0, 1, 0], [], []>} : vector<32x32xbf16>, vector<8x32xbf16>, vector<32x8xf32> -> vector<32x8xf32>
    "tpu.trace_stop"() : () -> ()
    %c1_108 = arith.constant 1 : index
    %c0_109 = arith.constant 0 : index
    %c0_110 = arith.constant 0 : index
    %197 = vector.load %arg12[%c1_108, %c0_109, %c0_110] : memref<2x32x1xf32, #tpu.memory_space<vmem>>, vector<1x32x1xf32>
    %198 = vector.shape_cast %197 : vector<1x32x1xf32> to vector<32x1xf32>
    %199 = vector.broadcast %198 : vector<32x1xf32> to vector<32x8xf32>
    %200 = arith.addf %196, %199 : vector<32x8xf32>
    %201 = vector.shape_cast %186 : vector<32x8xf32> to vector<4x8x8xf32>
    %202 = arith.truncf %201 : vector<4x8x8xf32> to vector<4x8x8xbf16>
    %203 = vector.shape_cast %193 : vector<32x8xf32> to vector<4x8x8xf32>
    %204 = arith.truncf %203 : vector<4x8x8xf32> to vector<4x8x8xbf16>
    %205 = vector.shape_cast %200 : vector<32x8xf32> to vector<4x8x8xf32>
    %206 = arith.truncf %205 : vector<4x8x8xf32> to vector<4x8x8xbf16>
    "tpu.trace_start"() <{level = 10 : i32, message = "hdq,hdk->hqk"}> : () -> ()
    %cst_111 = arith.constant dense<0.000000e+00> : vector<4x8x8xf32>
    %207 = tpu.matmul %202, %204, %cst_111 {dimension_numbers = #tpu.dot_dimension_numbers<[1], [1], [2], [2], [0, 0, 0, 2, 1, 2], [0], [0]>} : vector<4x8x8xbf16>, vector<4x8x8xbf16>, vector<4x8x8xf32> -> vector<4x8x8xf32>
    "tpu.trace_stop"() : () -> ()
    %cst_112 = arith.constant 0.353553385 : f32
    %208 = vector.broadcast %cst_112 : f32 to vector<4x8x8xf32>
    %209 = arith.mulf %207, %208 : vector<4x8x8xf32>
    %210 = vector.broadcast %46 : vector<1x1x8xf32> to vector<4x8x8xf32>
    %211 = arith.addf %209, %210 : vector<4x8x8xf32>
    %cst_113 = arith.constant dense<0xFF800000> : vector<4x8xf32>
    %212 = vector.multi_reduction <maximumf>, %211, %cst_113 [2] : vector<4x8x8xf32> to vector<4x8xf32>
    %213 = vector.shape_cast %212 : vector<4x8xf32> to vector<4x8x1xf32>
    %214 = vector.broadcast %213 : vector<4x8x1xf32> to vector<4x8x8xf32>
    %215 = arith.subf %211, %214 : vector<4x8x8xf32>
    %216 = math.exp %215 : vector<4x8x8xf32>
    %cst_114 = arith.constant dense<0.000000e+00> : vector<4x8xf32>
    %217 = vector.multi_reduction <add>, %216, %cst_114 [2] : vector<4x8x8xf32> to vector<4x8xf32>
    %218 = vector.shape_cast %217 : vector<4x8xf32> to vector<4x8x1xf32>
    %219 = tpu.reciprocal %218 {approx = true} : vector<4x8x1xf32> -> vector<4x8x1xf32>
    %220 = vector.broadcast %219 : vector<4x8x1xf32> to vector<4x8x8xf32>
    %221 = arith.mulf %216, %220 : vector<4x8x8xf32>
    %222 = arith.truncf %221 : vector<4x8x8xf32> to vector<4x8x8xbf16>
    "tpu.trace_start"() <{level = 10 : i32, message = "hdk,hqk->hdq"}> : () -> ()
    %cst_115 = arith.constant dense<0.000000e+00> : vector<4x8x8xf32>
    %223 = tpu.matmul %206, %222, %cst_115 {dimension_numbers = #tpu.dot_dimension_numbers<[2], [2], [1], [1], [0, 0, 0, 1, 1, 1], [0], [0]>} : vector<4x8x8xbf16>, vector<4x8x8xbf16>, vector<4x8x8xf32> -> vector<4x8x8xf32>
    "tpu.trace_stop"() : () -> ()
    %224 = vector.shape_cast %223 : vector<4x8x8xf32> to vector<32x8xf32>
    %225 = arith.truncf %224 : vector<32x8xf32> to vector<32x8xbf16>
    %c1_116 = arith.constant 1 : index
    %c0_117 = arith.constant 0 : index
    %c0_118 = arith.constant 0 : index
    %226 = vector.load %arg13[%c1_116, %c0_117, %c0_118] : memref<2x32x32xbf16, #tpu.memory_space<vmem>>, vector<1x32x32xbf16>
    %227 = vector.shape_cast %226 : vector<1x32x32xbf16> to vector<32x32xbf16>
    "tpu.trace_start"() <{level = 10 : i32, message = "ds,do->so"}> : () -> ()
    %cst_119 = arith.constant dense<0.000000e+00> : vector<8x32xf32>
    %228 = tpu.matmul %225, %227, %cst_119 {dimension_numbers = #tpu.dot_dimension_numbers<[0], [0], [1], [1], [0, 1, 1, 1], [], []>} : vector<32x8xbf16>, vector<32x32xbf16>, vector<8x32xf32> -> vector<8x32xf32>
    "tpu.trace_stop"() : () -> ()
    %c1_120 = arith.constant 1 : index
    %c0_121 = arith.constant 0 : index
    %c0_122 = arith.constant 0 : index
    %229 = vector.load %arg14[%c1_120, %c0_121, %c0_122] : memref<2x1x32xf32, #tpu.memory_space<vmem>>, vector<1x1x32xf32>
    %230 = vector.shape_cast %229 : vector<1x1x32xf32> to vector<1x32xf32>
    %231 = vector.broadcast %230 : vector<1x32xf32> to vector<8x32xf32>
    %232 = arith.addf %228, %231 : vector<8x32xf32>
    %233 = arith.addf %232, %178 : vector<8x32xf32>
    %c1_123 = arith.constant 1 : index
    %c0_124 = arith.constant 0 : index
    %c0_125 = arith.constant 0 : index
    %234 = vector.load %arg15[%c1_123, %c0_124, %c0_125] : memref<2x1x32xf32, #tpu.memory_space<vmem>>, vector<1x1x32xf32>
    %235 = vector.shape_cast %234 : vector<1x1x32xf32> to vector<1x32xf32>
    %c1_126 = arith.constant 1 : index
    %c0_127 = arith.constant 0 : index
    %c0_128 = arith.constant 0 : index
    %236 = vector.load %arg16[%c1_126, %c0_127, %c0_128] : memref<2x1x32xf32, #tpu.memory_space<vmem>>, vector<1x1x32xf32>
    %237 = vector.shape_cast %236 : vector<1x1x32xf32> to vector<1x32xf32>
    %cst_129 = arith.constant dense<0.000000e+00> : vector<8xf32>
    %238 = vector.multi_reduction <add>, %233, %cst_129 [1] : vector<8x32xf32> to vector<8xf32>
    %239 = vector.shape_cast %238 : vector<8xf32> to vector<8x1xf32>
    %cst_130 = arith.constant 3.200000e+01 : f32
    %240 = vector.broadcast %cst_130 : f32 to vector<8x1xf32>
    %241 = arith.divf %239, %240 : vector<8x1xf32>
    %242 = vector.broadcast %241 : vector<8x1xf32> to vector<8x32xf32>
    %243 = arith.subf %233, %242 : vector<8x32xf32>
    %244 = arith.mulf %243, %243 : vector<8x32xf32>
    %cst_131 = arith.constant dense<0.000000e+00> : vector<8xf32>
    %245 = vector.multi_reduction <add>, %244, %cst_131 [1] : vector<8x32xf32> to vector<8xf32>
    %246 = vector.shape_cast %245 : vector<8xf32> to vector<8x1xf32>
    %cst_132 = arith.constant 3.200000e+01 : f32
    %247 = vector.broadcast %cst_132 : f32 to vector<8x1xf32>
    %248 = arith.divf %246, %247 : vector<8x1xf32>
    %249 = vector.broadcast %241 : vector<8x1xf32> to vector<8x32xf32>
    %250 = arith.subf %233, %249 : vector<8x32xf32>
    %cst_133 = arith.constant 9.99999996E-13 : f32
    %251 = vector.broadcast %cst_133 : f32 to vector<8x1xf32>
    %252 = arith.addf %248, %251 : vector<8x1xf32>
    %253 = math.rsqrt %252 : vector<8x1xf32>
    %254 = vector.broadcast %253 : vector<8x1xf32> to vector<8x32xf32>
    %255 = arith.mulf %250, %254 : vector<8x32xf32>
    %256 = vector.broadcast %235 : vector<1x32xf32> to vector<8x32xf32>
    %257 = arith.mulf %255, %256 : vector<8x32xf32>
    %258 = vector.broadcast %237 : vector<1x32xf32> to vector<8x32xf32>
    %259 = arith.addf %257, %258 : vector<8x32xf32>
    %260 = arith.truncf %259 : vector<8x32xf32> to vector<8x32xbf16>
    %c1_134 = arith.constant 1 : index
    %c0_135 = arith.constant 0 : index
    %c0_136 = arith.constant 0 : index
    %261 = vector.load %arg17[%c1_134, %c0_135, %c0_136] : memref<2x32x64xbf16, #tpu.memory_space<vmem>>, vector<1x32x64xbf16>
    %262 = vector.shape_cast %261 : vector<1x32x64xbf16> to vector<32x64xbf16>
    %cst_137 = arith.constant dense<0.000000e+00> : vector<8x64xf32>
    %263 = tpu.matmul %260, %262, %cst_137 {dimension_numbers = #tpu.dot_dimension_numbers<[1], [0], [0], [1], [0, 0, 1, 1], [], []>} : vector<8x32xbf16>, vector<32x64xbf16>, vector<8x64xf32> -> vector<8x64xf32>
    %c1_138 = arith.constant 1 : index
    %c0_139 = arith.constant 0 : index
    %c0_140 = arith.constant 0 : index
    %264 = vector.load %arg18[%c1_138, %c0_139, %c0_140] : memref<2x1x64xf32, #tpu.memory_space<vmem>>, vector<1x1x64xf32>
    %265 = vector.shape_cast %264 : vector<1x1x64xf32> to vector<1x64xf32>
    %266 = vector.broadcast %265 : vector<1x64xf32> to vector<8x64xf32>
    %267 = arith.addf %263, %266 : vector<8x64xf32>
    %cst_141 = arith.constant 5.000000e-01 : f32
    %268 = vector.broadcast %cst_141 : f32 to vector<8x64xf32>
    %269 = arith.mulf %268, %267 : vector<8x64xf32>
    %cst_142 = arith.constant 0.707106769 : f32
    %270 = vector.broadcast %cst_142 : f32 to vector<8x64xf32>
    %271 = arith.mulf %267, %270 : vector<8x64xf32>
    %272 = math.erf %271 : vector<8x64xf32>
    %cst_143 = arith.constant 1.000000e+00 : f32
    %273 = vector.broadcast %cst_143 : f32 to vector<8x64xf32>
    %274 = arith.addf %273, %272 : vector<8x64xf32>
    %275 = arith.mulf %269, %274 : vector<8x64xf32>
    %276 = arith.truncf %275 : vector<8x64xf32> to vector<8x64xbf16>
    %c1_144 = arith.constant 1 : index
    %c0_145 = arith.constant 0 : index
    %c0_146 = arith.constant 0 : index
    %277 = vector.load %arg19[%c1_144, %c0_145, %c0_146] : memref<2x64x32xbf16, #tpu.memory_space<vmem>>, vector<1x64x32xbf16>
    %278 = vector.shape_cast %277 : vector<1x64x32xbf16> to vector<64x32xbf16>
    %cst_147 = arith.constant dense<0.000000e+00> : vector<8x32xf32>
    %279 = tpu.matmul %276, %278, %cst_147 {dimension_numbers = #tpu.dot_dimension_numbers<[1], [0], [0], [1], [0, 0, 1, 1], [], []>} : vector<8x64xbf16>, vector<64x32xbf16>, vector<8x32xf32> -> vector<8x32xf32>
    %c1_148 = arith.constant 1 : index
    %c0_149 = arith.constant 0 : index
    %c0_150 = arith.constant 0 : index
    %280 = vector.load %arg20[%c1_148, %c0_149, %c0_150] : memref<2x1x32xf32, #tpu.memory_space<vmem>>, vector<1x1x32xf32>
    %281 = vector.shape_cast %280 : vector<1x1x32xf32> to vector<1x32xf32>
    %282 = vector.broadcast %281 : vector<1x32xf32> to vector<8x32xf32>
    %283 = arith.addf %279, %282 : vector<8x32xf32>
    %284 = arith.addf %283, %259 : vector<8x32xf32>
    %c1_151 = arith.constant 1 : index
    %c0_152 = arith.constant 0 : index
    %c0_153 = arith.constant 0 : index
    %285 = vector.load %arg21[%c1_151, %c0_152, %c0_153] : memref<2x1x32xf32, #tpu.memory_space<vmem>>, vector<1x1x32xf32>
    %286 = vector.shape_cast %285 : vector<1x1x32xf32> to vector<1x32xf32>
    %c1_154 = arith.constant 1 : index
    %c0_155 = arith.constant 0 : index
    %c0_156 = arith.constant 0 : index
    %287 = vector.load %arg22[%c1_154, %c0_155, %c0_156] : memref<2x1x32xf32, #tpu.memory_space<vmem>>, vector<1x1x32xf32>
    %288 = vector.shape_cast %287 : vector<1x1x32xf32> to vector<1x32xf32>
    %cst_157 = arith.constant dense<0.000000e+00> : vector<8xf32>
    %289 = vector.multi_reduction <add>, %284, %cst_157 [1] : vector<8x32xf32> to vector<8xf32>
    %290 = vector.shape_cast %289 : vector<8xf32> to vector<8x1xf32>
    %cst_158 = arith.constant 3.200000e+01 : f32
    %291 = vector.broadcast %cst_158 : f32 to vector<8x1xf32>
    %292 = arith.divf %290, %291 : vector<8x1xf32>
    %293 = vector.broadcast %292 : vector<8x1xf32> to vector<8x32xf32>
    %294 = arith.subf %284, %293 : vector<8x32xf32>
    %295 = arith.mulf %294, %294 : vector<8x32xf32>
    %cst_159 = arith.constant dense<0.000000e+00> : vector<8xf32>
    %296 = vector.multi_reduction <add>, %295, %cst_159 [1] : vector<8x32xf32> to vector<8xf32>
    %297 = vector.shape_cast %296 : vector<8xf32> to vector<8x1xf32>
    %cst_160 = arith.constant 3.200000e+01 : f32
    %298 = vector.broadcast %cst_160 : f32 to vector<8x1xf32>
    %299 = arith.divf %297, %298 : vector<8x1xf32>
    %300 = vector.broadcast %292 : vector<8x1xf32> to vector<8x32xf32>
    %301 = arith.subf %284, %300 : vector<8x32xf32>
    %cst_161 = arith.constant 9.99999996E-13 : f32
    %302 = vector.broadcast %cst_161 : f32 to vector<8x1xf32>
    %303 = arith.addf %299, %302 : vector<8x1xf32>
    %304 = math.rsqrt %303 : vector<8x1xf32>
    %305 = vector.broadcast %304 : vector<8x1xf32> to vector<8x32xf32>
    %306 = arith.mulf %301, %305 : vector<8x32xf32>
    %307 = vector.broadcast %286 : vector<1x32xf32> to vector<8x32xf32>
    %308 = arith.mulf %306, %307 : vector<8x32xf32>
    %309 = vector.broadcast %288 : vector<1x32xf32> to vector<8x32xf32>
    %310 = arith.addf %308, %309 : vector<8x32xf32>
    %311 = arith.truncf %310 : vector<8x32xf32> to vector<8x32xbf16>
    %c0_162 = arith.constant 0 : index
    %c0_163 = arith.constant 0 : index
    %312 = vector.load %arg23[%c0_162, %c0_163] : memref<32x32xbf16, #tpu.memory_space<vmem>>, vector<32x32xbf16>
    %cst_164 = arith.constant dense<0.000000e+00> : vector<8x32xf32>
    %313 = tpu.matmul %311, %312, %cst_164 {dimension_numbers = #tpu.dot_dimension_numbers<[1], [0], [0], [1], [0, 0, 1, 1], [], []>} : vector<8x32xbf16>, vector<32x32xbf16>, vector<8x32xf32> -> vector<8x32xf32>
    %c0_165 = arith.constant 0 : index
    %c0_166 = arith.constant 0 : index
    %314 = vector.load %arg24[%c0_165, %c0_166] : memref<1x32xf32, #tpu.memory_space<vmem>>, vector<1x32xf32>
    %315 = vector.broadcast %314 : vector<1x32xf32> to vector<8x32xf32>
    %316 = arith.addf %313, %315 : vector<8x32xf32>
    %cst_167 = arith.constant 5.000000e-01 : f32
    %317 = vector.broadcast %cst_167 : f32 to vector<8x32xf32>
    %318 = arith.mulf %317, %316 : vector<8x32xf32>
    %cst_168 = arith.constant 0.707106769 : f32
    %319 = vector.broadcast %cst_168 : f32 to vector<8x32xf32>
    %320 = arith.mulf %316, %319 : vector<8x32xf32>
    %321 = math.erf %320 : vector<8x32xf32>
    %cst_169 = arith.constant 1.000000e+00 : f32
    %322 = vector.broadcast %cst_169 : f32 to vector<8x32xf32>
    %323 = arith.addf %322, %321 : vector<8x32xf32>
    %324 = arith.mulf %318, %323 : vector<8x32xf32>
    %c0_170 = arith.constant 0 : index
    %c0_171 = arith.constant 0 : index
    %325 = vector.load %arg25[%c0_170, %c0_171] : memref<1x32xf32, #tpu.memory_space<vmem>>, vector<1x32xf32>
    %c0_172 = arith.constant 0 : index
    %c0_173 = arith.constant 0 : index
    %326 = vector.load %arg26[%c0_172, %c0_173] : memref<1x32xf32, #tpu.memory_space<vmem>>, vector<1x32xf32>
    %cst_174 = arith.constant dense<0.000000e+00> : vector<8xf32>
    %327 = vector.multi_reduction <add>, %324, %cst_174 [1] : vector<8x32xf32> to vector<8xf32>
    %328 = vector.shape_cast %327 : vector<8xf32> to vector<8x1xf32>
    %cst_175 = arith.constant 3.200000e+01 : f32
    %329 = vector.broadcast %cst_175 : f32 to vector<8x1xf32>
    %330 = arith.divf %328, %329 : vector<8x1xf32>
    %331 = vector.broadcast %330 : vector<8x1xf32> to vector<8x32xf32>
    %332 = arith.subf %324, %331 : vector<8x32xf32>
    %333 = arith.mulf %332, %332 : vector<8x32xf32>
    %cst_176 = arith.constant dense<0.000000e+00> : vector<8xf32>
    %334 = vector.multi_reduction <add>, %333, %cst_176 [1] : vector<8x32xf32> to vector<8xf32>
    %335 = vector.shape_cast %334 : vector<8xf32> to vector<8x1xf32>
    %cst_177 = arith.constant 3.200000e+01 : f32
    %336 = vector.broadcast %cst_177 : f32 to vector<8x1xf32>
    %337 = arith.divf %335, %336 : vector<8x1xf32>
    %338 = vector.broadcast %330 : vector<8x1xf32> to vector<8x32xf32>
    %339 = arith.subf %324, %338 : vector<8x32xf32>
    %cst_178 = arith.constant 9.99999996E-13 : f32
    %340 = vector.broadcast %cst_178 : f32 to vector<8x1xf32>
    %341 = arith.addf %337, %340 : vector<8x1xf32>
    %342 = math.rsqrt %341 : vector<8x1xf32>
    %343 = vector.broadcast %342 : vector<8x1xf32> to vector<8x32xf32>
    %344 = arith.mulf %339, %343 : vector<8x32xf32>
    %345 = vector.broadcast %325 : vector<1x32xf32> to vector<8x32xf32>
    %346 = arith.mulf %344, %345 : vector<8x32xf32>
    %347 = vector.broadcast %326 : vector<1x32xf32> to vector<8x32xf32>
    %348 = arith.addf %346, %347 : vector<8x32xf32>
    %349 = arith.truncf %348 : vector<8x32xf32> to vector<8x32xbf16>
    %c0_179 = arith.constant 0 : index
    %c0_180 = arith.constant 0 : index
    %350 = vector.load %arg27[%c0_179, %c0_180] : memref<32x128xbf16, #tpu.memory_space<vmem>>, vector<32x128xbf16>
    %cst_181 = arith.constant dense<0.000000e+00> : vector<8x128xf32>
    %351 = tpu.matmul %349, %350, %cst_181 {dimension_numbers = #tpu.dot_dimension_numbers<[1], [0], [0], [1], [0, 0, 1, 1], [], []>} : vector<8x32xbf16>, vector<32x128xbf16>, vector<8x128xf32> -> vector<8x128xf32>
    %c0_182 = arith.constant 0 : index
    %c0_183 = arith.constant 0 : index
    %352 = vector.load %arg28[%c0_182, %c0_183] : memref<1x128xf32, #tpu.memory_space<vmem>>, vector<1x128xf32>
    %353 = vector.broadcast %352 : vector<1x128xf32> to vector<8x128xf32>
    %354 = arith.addf %351, %353 : vector<8x128xf32>
    %c0_184 = arith.constant 0 : index
    %c0_185 = arith.constant 0 : index
    %c0_186 = arith.constant 0 : index
    %355 = vector.load %arg29[%c0_184, %c0_185, %c0_186] : memref<1x8x128xf32, #tpu.memory_space<vmem>>, vector<1x8x128xf32>
    %356 = vector.shape_cast %355 : vector<1x8x128xf32> to vector<8x128xf32>
    %357 = vector.shape_cast %354 : vector<8x128xf32> to vector<1x8x128xf32>
    tpu.vector_store %arg29[%c0_184, %c0_185, %c0_186], %357 {strides = array<i32>} : memref<1x8x128xf32, #tpu.memory_space<vmem>>, vector<1x8x128xf32>,
    return
  }
  func.func @transform_0(%arg0: i32) -> (i32, i32, i32) {
    %c0_i32 = arith.constant 0 : i32
    %c0_i32_0 = arith.constant 0 : i32
    %c0_i32_1 = arith.constant 0 : i32
    return %arg0, %c0_i32, %c0_i32_0 : i32, i32, i32
  }
  func.func @transform_1(%arg0: i32) -> (i32, i32, i32) {
    %c0_i32 = arith.constant 0 : i32
    %c0_i32_0 = arith.constant 0 : i32
    %c0_i32_1 = arith.constant 0 : i32
    return %arg0, %c0_i32, %c0_i32_0 : i32, i32, i32
  }
  func.func @transform_2(%arg0: i32) -> (i32, i32, i32) {
    %c0_i32 = arith.constant 0 : i32
    %c0_i32_0 = arith.constant 0 : i32
    %c0_i32_1 = arith.constant 0 : i32
    return %arg0, %c0_i32, %c0_i32_0 : i32, i32, i32
  }
  func.func @transform_3(%arg0: i32) -> (i32, i32) {
    %c0_i32 = arith.constant 0 : i32
    %c0_i32_0 = arith.constant 0 : i32
    %c0_i32_1 = arith.constant 0 : i32
    return %c0_i32, %c0_i32_0 : i32, i32
  }
  func.func @transform_4(%arg0: i32) -> (i32, i32) {
    %c0_i32 = arith.constant 0 : i32
    %c0_i32_0 = arith.constant 0 : i32
    %c0_i32_1 = arith.constant 0 : i32
    return %c0_i32, %c0_i32_0 : i32, i32
  }
  func.func @transform_5(%arg0: i32) -> (i32, i32) {
    %c0_i32 = arith.constant 0 : i32
    %c0_i32_0 = arith.constant 0 : i32
    %c0_i32_1 = arith.constant 0 : i32
    return %c0_i32, %c0_i32_0 : i32, i32
  }
  func.func @transform_6(%arg0: i32) -> (i32, i32, i32) {
    %c0_i32 = arith.constant 0 : i32
    %c0_i32_0 = arith.constant 0 : i32
    %c0_i32_1 = arith.constant 0 : i32
    %c0_i32_2 = arith.constant 0 : i32
    return %c0_i32, %c0_i32_0, %c0_i32_1 : i32, i32, i32
  }
  func.func @transform_7(%arg0: i32) -> (i32, i32, i32) {
    %c0_i32 = arith.constant 0 : i32
    %c0_i32_0 = arith.constant 0 : i32
    %c0_i32_1 = arith.constant 0 : i32
    %c0_i32_2 = arith.constant 0 : i32
    return %c0_i32, %c0_i32_0, %c0_i32_1 : i32, i32, i32
  }
  func.func @transform_8(%arg0: i32) -> (i32, i32, i32) {
    %c0_i32 = arith.constant 0 : i32
    %c0_i32_0 = arith.constant 0 : i32
    %c0_i32_1 = arith.constant 0 : i32
    %c0_i32_2 = arith.constant 0 : i32
    return %c0_i32, %c0_i32_0, %c0_i32_1 : i32, i32, i32
  }
  func.func @transform_9(%arg0: i32) -> (i32, i32, i32) {
    %c0_i32 = arith.constant 0 : i32
    %c0_i32_0 = arith.constant 0 : i32
    %c0_i32_1 = arith.constant 0 : i32
    %c0_i32_2 = arith.constant 0 : i32
    return %c0_i32, %c0_i32_0, %c0_i32_1 : i32, i32, i32
  }
  func.func @transform_10(%arg0: i32) -> (i32, i32, i32) {
    %c0_i32 = arith.constant 0 : i32
    %c0_i32_0 = arith.constant 0 : i32
    %c0_i32_1 = arith.constant 0 : i32
    %c0_i32_2 = arith.constant 0 : i32
    return %c0_i32, %c0_i32_0, %c0_i32_1 : i32, i32, i32
  }
  func.func @transform_11(%arg0: i32) -> (i32, i32, i32) {
    %c0_i32 = arith.constant 0 : i32
    %c0_i32_0 = arith.constant 0 : i32
    %c0_i32_1 = arith.constant 0 : i32
    %c0_i32_2 = arith.constant 0 : i32
    return %c0_i32, %c0_i32_0, %c0_i32_1 : i32, i32, i32
  }
  func.func @transform_12(%arg0: i32) -> (i32, i32, i32) {
    %c0_i32 = arith.constant 0 : i32
    %c0_i32_0 = arith.constant 0 : i32
    %c0_i32_1 = arith.constant 0 : i32
    %c0_i32_2 = arith.constant 0 : i32
    return %c0_i32, %c0_i32_0, %c0_i32_1 : i32, i32, i32
  }
  func.func @transform_13(%arg0: i32) -> (i32, i32, i32) {
    %c0_i32 = arith.constant 0 : i32
    %c0_i32_0 = arith.constant 0 : i32
    %c0_i32_1 = arith.constant 0 : i32
    %c0_i32_2 = arith.constant 0 : i32
    return %c0_i32, %c0_i32_0, %c0_i32_1 : i32, i32, i32
  }
  func.func @transform_14(%arg0: i32) -> (i32, i32, i32) {
    %c0_i32 = arith.constant 0 : i32
    %c0_i32_0 = arith.constant 0 : i32
    %c0_i32_1 = arith.constant 0 : i32
    %c0_i32_2 = arith.constant 0 : i32
    return %c0_i32, %c0_i32_0, %c0_i32_1 : i32, i32, i32
  }
  func.func @transform_15(%arg0: i32) -> (i32, i32, i32) {
    %c0_i32 = arith.constant 0 : i32
    %c0_i32_0 = arith.constant 0 : i32
    %c0_i32_1 = arith.constant 0 : i32
    %c0_i32_2 = arith.constant 0 : i32
    return %c0_i32, %c0_i32_0, %c0_i32_1 : i32, i32, i32
  }
  func.func @transform_16(%arg0: i32) -> (i32, i32, i32) {
    %c0_i32 = arith.constant 0 : i32
    %c0_i32_0 = arith.constant 0 : i32
    %c0_i32_1 = arith.constant 0 : i32
    %c0_i32_2 = arith.constant 0 : i32
    return %c0_i32, %c0_i32_0, %c0_i32_1 : i32, i32, i32
  }
  func.func @transform_17(%arg0: i32) -> (i32, i32, i32) {
    %c0_i32 = arith.constant 0 : i32
    %c0_i32_0 = arith.constant 0 : i32
    %c0_i32_1 = arith.constant 0 : i32
    %c0_i32_2 = arith.constant 0 : i32
    return %c0_i32, %c0_i32_0, %c0_i32_1 : i32, i32, i32
  }
  func.func @transform_18(%arg0: i32) -> (i32, i32, i32) {
    %c0_i32 = arith.constant 0 : i32
    %c0_i32_0 = arith.constant 0 : i32
    %c0_i32_1 = arith.constant 0 : i32
    %c0_i32_2 = arith.constant 0 : i32
    return %c0_i32, %c0_i32_0, %c0_i32_1 : i32, i32, i32
  }
  func.func @transform_19(%arg0: i32) -> (i32, i32, i32) {
    %c0_i32 = arith.constant 0 : i32
    %c0_i32_0 = arith.constant 0 : i32
    %c0_i32_1 = arith.constant 0 : i32
    %c0_i32_2 = arith.constant 0 : i32
    return %c0_i32, %c0_i32_0, %c0_i32_1 : i32, i32, i32
  }
  func.func @transform_20(%arg0: i32) -> (i32, i32, i32) {
    %c0_i32 = arith.constant 0 : i32
    %c0_i32_0 = arith.constant 0 : i32
    %c0_i32_1 = arith.constant 0 : i32
    %c0_i32_2 = arith.constant 0 : i32
    return %c0_i32, %c0_i32_0, %c0_i32_1 : i32, i32, i32
  }
  func.func @transform_21(%arg0: i32) -> (i32, i32, i32) {
    %c0_i32 = arith.constant 0 : i32
    %c0_i32_0 = arith.constant 0 : i32
    %c0_i32_1 = arith.constant 0 : i32
    %c0_i32_2 = arith.constant 0 : i32
    return %c0_i32, %c0_i32_0, %c0_i32_1 : i32, i32, i32
  }
  func.func @transform_22(%arg0: i32) -> (i32, i32) {
    %c0_i32 = arith.constant 0 : i32
    %c0_i32_0 = arith.constant 0 : i32
    %c0_i32_1 = arith.constant 0 : i32
    return %c0_i32, %c0_i32_0 : i32, i32
  }
  func.func @transform_23(%arg0: i32) -> (i32, i32) {
    %c0_i32 = arith.constant 0 : i32
    %c0_i32_0 = arith.constant 0 : i32
    %c0_i32_1 = arith.constant 0 : i32
    return %c0_i32, %c0_i32_0 : i32, i32
  }
  func.func @transform_24(%arg0: i32) -> (i32, i32) {
    %c0_i32 = arith.constant 0 : i32
    %c0_i32_0 = arith.constant 0 : i32
    %c0_i32_1 = arith.constant 0 : i32
    return %c0_i32, %c0_i32_0 : i32, i32
  }
  func.func @transform_25(%arg0: i32) -> (i32, i32) {
    %c0_i32 = arith.constant 0 : i32
    %c0_i32_0 = arith.constant 0 : i32
    %c0_i32_1 = arith.constant 0 : i32
    return %c0_i32, %c0_i32_0 : i32, i32
  }
  func.func @transform_26(%arg0: i32) -> (i32, i32) {
    %c0_i32 = arith.constant 0 : i32
    %c0_i32_0 = arith.constant 0 : i32
    %c0_i32_1 = arith.constant 0 : i32
    return %c0_i32, %c0_i32_0 : i32, i32
  }
  func.func @transform_27(%arg0: i32) -> (i32, i32) {
    %c0_i32 = arith.constant 0 : i32
    %c0_i32_0 = arith.constant 0 : i32
    %c0_i32_1 = arith.constant 0 : i32
    return %c0_i32, %c0_i32_0 : i32, i32
  }
  func.func @transform_28(%arg0: i32) -> (i32, i32, i32) {
    %c0_i32 = arith.constant 0 : i32
    %c0_i32_0 = arith.constant 0 : i32
    %c0_i32_1 = arith.constant 0 : i32
    return %arg0, %c0_i32, %c0_i32_0 : i32, i32, i32
  }
}

</mosaic_0001>

<bundles_post_ra>
// kernel: tpu_custom_call.1
= control target key start
LH: loop header
LB: loop body
LE: loop exit
PB: predicated region body
PF: predicated region fallthrough
CT: control target
= control target key end

     0   :  { %s4897_s0 = inlined_call_operand.vmem [shape: s32[2,8,1], index: 0, kind: input, shape index: {}]   ;;  %s4898_s1 = inlined_call_operand.vmem [shape: s32[2,8,1], index: 1, kind: input, shape index: {}]   ;;  %s4899_s2 = inlined_call_operand.vmem [shape: f32[2,1,8], index: 2, kind: input, shape index: {}]   ;;  %s4900_s3 = inlined_call_operand.vmem [shape: bf16[146,32], index: 3, kind: input, shape index: {}]   ;;  %s4901_s4 = inlined_call_operand.vmem [shape: f32[1,32], index: 4, kind: input, shape index: {}]   ;;  %s4902_s5 = inlined_call_operand.vmem [shape: f32[1,32], index: 5, kind: input, shape index: {}]   ;;  %s4903_s6 = inlined_call_operand.vmem [shape: bf16[2,32,32], index: 6, kind: input, shape index: {}]   ;;  %s4904_s7 = inlined_call_operand.vmem [shape: f32[2,32,1], index: 7, kind: input, shape index: {}]   ;;  %s4905_s8 = inlined_call_operand.vmem [shape: bf16[2,32,32], index: 8, kind: input, shape index: {}]   ;;  %s4906_s9 = inlined_call_operand.vmem [shape: f32[2,32,1], index: 9, kind: input, shape index: {}]   ;;  %s4907_s10 = inlined_call_operand.vmem [shape: bf16[2,32,32], index: 10, kind: input, shape index: {}]   ;;  %s4908_s11 = inlined_call_operand.vmem [shape: f32[2,32,1], index: 11, kind: input, shape index: {}]   ;;  %s4909_s12 = inlined_call_operand.vmem [shape: bf16[2,32,32], index: 12, kind: input, shape index: {}]   ;;  %s4910_s13 = inlined_call_operand.vmem [shape: f32[2,1,32], index: 13, kind: input, shape index: {}]   ;;  %s4911_s14 = inlined_call_operand.vmem [shape: f32[2,1,32], index: 14, kind: input, shape index: {}]   ;;  %s4912_s15 = inlined_call_operand.vmem [shape: f32[2,1,32], index: 15, kind: input, shape index: {}]   ;;  %s4913_s16 = inlined_call_operand.vmem [shape: bf16[2,32,64], index: 16, kind: input, shape index: {}]   ;;  %s4914_s17 = inlined_call_operand.vmem [shape: f32[2,1,64], index: 17, kind: input, shape index: {}]   ;;  %s4915_s18 = inlined_call_operand.vmem [shape: bf16[2,64,32], index: 18, kind: input, shape index: {}]   ;;  %s4916_s19 = inlined_call_operand.vmem [shape: f32[2,1,32], index: 19, kind: input, shape index: {}]   ;;  %s4917_s20 = inlined_call_operand.vmem [shape: f32[2,1,32], index: 20, kind: input, shape index: {}]   ;;  %s4918_s21 = inlined_call_operand.vmem [shape: f32[2,1,32], index: 21, kind: input, shape index: {}]   ;;  %s4919_s22 = inlined_call_operand.vmem [shape: bf16[32,32], index: 22, kind: input, shape index: {}]   ;;  %s4920_s23 = inlined_call_operand.vmem [shape: f32[1,32], index: 23, kind: input, shape index: {}]   ;;  %s4921_s24 = inlined_call_operand.vmem [shape: f32[1,32], index: 24, kind: input, shape index: {}]   ;;  %s4922_s25 = inlined_call_operand.vmem [shape: f32[1,32], index: 25, kind: input, shape index: {}]   ;;  %s4923_s26 = inlined_call_operand.vmem [shape: bf16[32,128], index: 26, kind: input, shape index: {}]   ;;  %s4924_s27 = inlined_call_operand.vmem [shape: f32[1,128], index: 27, kind: input, shape index: {}]   ;;  %s4925_s28 = inlined_call_operand.hbm [shape: f32[2,8,128], index: 28, kind: output, shape index: {}]  }
   0x1   :  { %4947 = sst [smem:[#allocation12_spill]] %s4897_s0 }
   0x2   :  { %4948 = sst [smem:[#allocation13_spill]] %s4898_s1 }
   0x3   :  { %4949 = sst [smem:[#allocation14_spill]] %s4899_s2 }
   0x4   :  { %4950 = sst [smem:[#allocation15_spill]] %s4900_s3 }
   0x5   :  { %4951 = sst [smem:[#allocation16_spill]] %s4901_s4 }
   0x6   :  { %4952 = sst [smem:[#allocation17_spill]] %s4902_s5 }
   0x7   :  { %4953 = sst [smem:[#allocation18_spill]] %s4903_s6 }
   0x8   :  { %4954 = sst [smem:[#allocation19_spill]] %s4904_s7 }
   0x9   :  { %4955 = sst [smem:[#allocation20_spill]] %s4905_s8 }
   0xa   :  { %4956 = sst [smem:[#allocation21_spill]] %s4906_s9 }
   0xb   :  { %4957 = sst [smem:[#allocation22_spill]] %s4907_s10 }
   0xc   :  { %4958 = sst [smem:[#allocation23_spill]] %s4908_s11 }
   0xd   :  { %4959 = sst [smem:[#allocation24_spill]] %s4909_s12 }
   0xe   :  { %4960 = sst [smem:[#allocation25_spill]] %s4921_s24 }
   0xf   :  { %4961 = sst [smem:[#allocation26_spill]] %s4922_s25 }
  0x10   :  { %4962 = sst [smem:[#allocation27_spill]] %s4924_s27 }
  0x11   :  { %4963 = sst [smem:[#allocation28_spill]] %s4925_s28 }
  0x12   :  { %33 = vsyncpa [#allocation3], 0 }
  0x13   :  { %35 = vsyncpa [#allocation3 + $0x1], 0  ;;  %s4312_s8 = smov 0   ;;  %s4314_s5 = smov 0  }
  0x14   :  { %s4316_s9 = smov 0   ;;  %s4318_s30 = smov 0  }
  0x15 LB: > { %4964 = sst [smem:[#allocation5_spill]] %s4148_s8  ;;  %s4333_s3 = sadd.s32 4294967295, %s4160_s30   ;;  %s4160_s30 = sphi %s4318_s30, %s4994_s30   ;;  %s4156_s9 = sphi %s4316_s9, %s4996_s9   ;;  %s4152_s5 = sphi %s4314_s5, %s4998_s5   ;;  %s4148_s8 = sphi %s4312_s8, %s4997_s8  }
  0x16   : > { %4965 = sst [smem:[#allocation6_spill]] %s4156_s9  ;;  %s3511_s6 = sadd.s32 4294967294, %s4160_s30  }
  0x17   : > { %4966 = sst [smem:[#allocation7_spill]] %s4160_s30  ;;  %s4337_s10 = sadd.s32 1, %s4160_s30  }
  0x18   : > { %4967 = sst [smem:[#allocation8_spill]] %s4337_s10  ;;  %s651_s0 = sadd.s32 1, %s4156_s9 }
  0x19   : > { %s648_s11 = ssub.s32 %s4160_s30, %s4337_s10  ;;  %p661_p0 = scmp.ne.s32.totalorder %s4156_s9, %s4152_s5 }
  0x1a   : > { %p649_p1 = scmp.eq.s32.totalorder %s648_s11, 0  ;;  %p662_p2 = scmp.eq.s32.totalorder %s4333_s3, 1 }
  0x1b   : > { %p667_p3 = scmp.ne.s32.totalorder %s4152_s5, %s4148_s8  ;;  %p668_p4 = scmp.eq.s32.totalorder %s3511_s6, 1 }
  0x1c   : > { %s4348_s29 = scalar_select %p649_p1, %s4156_s9, %s651_s0  }
  0x1d   : > { %p4350_p5 = por %p662_p2, %p661_p0  ;;  %p4354_p6 = por %p668_p4, %p667_p3 }
  0x1e   : > { %4968 = sst [smem:[#allocation9_spill]] %s4348_s29  ;;  %p3514_p7 = scmp.ge.s32.totalorder %s4160_s30, 1 }
  0x1f   : > { %s4969_s2 = scalar_select %p4350_p5, 1, 0 }
  0x20   : > { %s4971_s7 = scalar_select %p4354_p6, 1, 0 }
  0x21   : > { %4970 = sst [smem:[#allocation10_spill]] %s4969_s2  ;;  %p781_p8 = scmp.lt.s32.totalorder %s4160_s30, 3 }
  0x22   : > { %4972 = sst [smem:[#allocation11_spill]] %s4971_s7 }
  0x23   : > { %p782_p9 = pnand %p3514_p7, %p781_p8 }
  0x24   : > { %p861_p10 = scmp.lt.s32.totalorder (!%p782_p9), %s4333_s3, 1  ;;  %v4162_v0 = vmov (!%p782_p9), 0   ;;  %s4973_s6 = sld [smem:[#allocation15_spill]] (!%p782_p9)  ;;  %vm983_vm0 = vcmask (!%p782_p9), 1040384   ;;  %v4163_v20 = vmov (!%p782_p9), 0.0   ;;  %v873_v21 = vlaneseq (!%p782_p9) }
  0x25   : > { %785 = sbr.rel (%p782_p9) target bundleno = 6469 (0x1945), region = 132  ;;  %4004 = vset.pattern.permute.xlu0 (!%p782_p9), %v4162_v0  ;;  %987 = vmatprep.subr.bf16.mxu0 (!%p782_p9), %v4162_v0  ;;  %s4974_s7 = sld [smem:[#allocation12_spill]] (!%p782_p9)  ;;  %vm979_vm9 = vcmask (!%p782_p9), 146432   ;;  %v4164_v30 = vmov (!%p782_p9), 1.0|1.0   ;;  %vm1029_vm11 = vcmask (!%p782_p9), 261120  }
  0x26   : > { %4005 = vset.pattern.permute.xlu1 (!%p782_p9), %v4162_v0  ;;  %s4975_s2 = sld [smem:[#allocation13_spill]] (!%p782_p9)  ;;  %s4976_s25 = sld [smem:[#allocation19_spill]] (!%p782_p9)  ;;  %v874_v22 = vand.u32 (!%p782_p9), 127, %v873_v21  ;;  %v877_v23 = vshrl.u32 (!%p782_p9), %v873_v21, 7  ;;  %vm4165_vm12 = vmmov (!%p782_p9), 0   ;;  %vm1374_vm13 = vcmask (!%p782_p9), 1043456  }
  0x27   : > { %s4977_s11 = sld [smem:[#allocation21_spill]] (!%p782_p9)  ;;  %s4978_s28 = sld [smem:[#allocation18_spill]] (!%p782_p9)  ;;  %vm1370_vm14 = vcmask (!%p782_p9), 64512   ;;  %vm2076_vm15 = vcmask (!%p782_p9), 523264  }
  0x28   : > { %v875_v25 = vadd.s32 (!%p782_p9), 128, %v874_v22  ;;  %v892_v26 = vadd.s32 (!%p782_p9), 130, %v877_v23  ;;  %s4979_s1 = sld [smem:[#allocation16_spill]] (!%p782_p9)  ;;  %s4980_s9 = sld [smem:[#allocation17_spill]] (!%p782_p9) }
  0x29   : > { %s4982_s29 = sld [smem:[#allocation22_spill]] (!%p782_p9)  ;;  %s4986_s10 = sld [smem:[#allocation25_spill]] (!%p782_p9) }
  0x2a   : > { %v4006_v1 = vld [vmem:[%s4973_s6] sm:$0xff] (!%p782_p9)   ;;  %v4007_v2 = vld [vmem:[%s4973_s6 + $0x8] sm:$0xff] (!%p782_p9)   ;;  %v4008_v4 = vld [vmem:[%s4973_s6 + $0x10] sm:$0xff] (!%p782_p9)   ;;  %vm894_vm3 = vcmp.eq.s32.totalorder (!%p782_p9), %v875_v25, %v892_v26  ;;  %s858_s30 = sand.u32 (!%p782_p9), 1, %s4152_s5   ;;  %s4990_s24 = sld [smem:[#allocation28_spill]] (!%p782_p9) }
  0x2b   : > { %988 = vmatpush1.bf16.msra.mxu0 (!%p782_p9), %v4006_v1  ;;  %v4009_v7 = vld [vmem:[%s4973_s6 + $0x18] sm:$0xff] (!%p782_p9)   ;;  %v4010_v9 = vld [vmem:[%s4973_s6 + $0x20] sm:$0xff] (!%p782_p9)   ;;  %v4011_v11 = vld [vmem:[%s4973_s6 + $0x28] sm:$0xff] (!%p782_p9)  }
  0x2c   : > { %s4362_s12 = scalar_select %p861_p10, %s4333_s3, 1  ;;  %989 = vmatprep.subr.bf16.mxu0 %v4162_v0  ;;  %v1064_v6 = vld [vmem:[%s4976_s25] sm:$0xff]  ;;  %v1066_v8 = vld [vmem:[%s4976_s25 + $0x10] sm:$0xff]  ;;  %v1067_v10 = vld [vmem:[%s4976_s25 + $0x18] sm:$0xff] }
  0x2d   : > { %v1160_v12 = vld [vmem:[%s4977_s11] sm:$0xff]  ;;  %v4012_v13 = vld [vmem:[%s4973_s6 + $0x30] sm:$0xff]   ;;  %v1161_v14 = vld [vmem:[%s4977_s11 + $0x8] sm:$0xff] }
  0x2e   : > { %s3516_s0 = sshll.u32 %s4362_s12, 3  ;;  %v4013_v15 = vld [vmem:[%s4973_s6 + $0x38] sm:$0xff]   ;;  %v4014_v17 = vld [vmem:[%s4973_s6 + $0x40] sm:$0xff]   ;;  %v4015_v18 = vld [vmem:[%s4973_s6 + $0x48] ss:$0 sps:$4 sm:$0x11]  }
  0x2f   : > { %s864_s8 = scalar_lea.vmem %s4974_s7, %s3516_s0  ;;  %s868_s27 = scalar_lea.vmem %s4975_s2, %s3516_s0  ;;  %990 = vmatpush1.bf16.msra.mxu0 %v4007_v2  ;;  %v1163_v16 = vld [vmem:[%s4977_s11 + $0x18] sm:$0xff]  ;;  %v985_v19 = vsel %vm983_vm0, %v4015_v18, 0  ;;  %v4016_v41 = vld [vmem:[%s4978_s28] sm:$0xff]   ;;  %v1065_v42 = vld [vmem:[%s4976_s25 + $0x8] sm:$0xff] }
  0x30   : > { %v878_v3 = vld [vmem:[%s864_s8] sm:$0xff]  ;;  %991 = vmatprep.subr.bf16.mxu0 %v4162_v0  ;;  %3753 = vmatprep.mubr.msk.bf16.mxu1 %vm1029_vm11, %v4016_v41  ;;  %v1162_v43 = vld [vmem:[%s4977_s11 + $0x10] sm:$0xff]  ;;  %v4017_v55 = vld [vmem:[%s4978_s28 + $0x8] sm:$0xff]   ;;  %s4981_s2 = sld [smem:[#allocation20_spill]]  ;;  %s4985_s0 = sld [smem:[#allocation24_spill]] }
  0x31   : > { %880 = vperm.xlu0 %4004, %v878_v3   ;;  %v884_v5 = vld [vmem:[%s868_s27] sm:$0xff]  ;;  %v4021_v59 = vld [vmem:[%s4982_s29 + $0x8] sm:$0xff]   ;;  %s4983_s27 = sld [smem:[#allocation14_spill]]  ;;  %s4987_s6 = sld [smem:[#allocation26_spill]] }
  0x32   : > { %v3533_v48 = vld [vmem:[%s4979_s1] ss:$0 sm:$0xff]  ;;  %s4984_s1 = sld [smem:[#allocation23_spill]] }
  0x33   : > { %992 = vmatpush1.bf16.msra.mxu0 %v4008_v4  ;;  %v3534_v50 = vld [vmem:[%s4980_s9] ss:$0 sm:$0xff] }
  0x34   : > { %993 = vmatprep.subr.bf16.mxu0 %v4162_v0  ;;  %v4020_v58 = vld [vmem:[%s4982_s29] sm:$0xff]  }
  0x35   : > { %886 = vperm.xlu0 %4004, %v884_v5  }
  0x36   : > { %v4018_v56 = vld [vmem:[%s4981_s2] sm:$0xff]   ;;  %v4019_v57 = vld [vmem:[%s4981_s2 + $0x8] sm:$0xff]  }
  0x37   : > { %994 = vmatpush1.bf16.msra.mxu0 %v4009_v7  ;;  %s871_s7 = scalar_lea.vmem %s4983_s27, %s4362_s12  ;;  %s3515_s27 = sshll.u32 %s858_s30, 3 }
  0x38   : > { %995 = vmatprep.subr.bf16.mxu0 %v4162_v0  ;;  %v4504_v41 = vld [vmem:[%s871_s7] ss:$0 sm:$0xff]  ;;  %s860_s4 = scalar_lea.vmem [#allocation2], %s3515_s27  ;;  %s4166_s27 = smov [#allocation2]  }
  0x39   : > { %1070 = vperm.xlu0 %4004, %v1064_v6   ;;  %s3431_s9 = sshll.u32 %s860_s4, 4  ;;  %s4102_s7 = sshll.u32 %s4166_s27, 4  ;;  %s4857_s9 = int_to_ptr.vmem [resolvable:$true] %s3431_s9  ;;  %s4103_s7 = int_to_ptr.vmem [resolvable:$false] %s4102_s7 }
  0x3a   : > { %s4104_s12 = scalar_lea.vmem %s4103_s7, 256  ;;  %p4105_p0 = scmp.lt.s32.totalorder %s4857_s9, %s4103_s7 }
  0x3b   : > { %996 = vmatpush1.bf16.msra.mxu0 %v4010_v9 }
  0x3c   : > { %997 = vmatprep.subr.bf16.mxu0 %v4162_v0 }
  0x3d   : > { %1080 = vperm.xlu0 %4004, %v1066_v8  }
  0x3f   : > { %998 = vmatpush1.bf16.msra.mxu0 %v4011_v11 }
  0x40   : > { %999 = vmatprep.subr.bf16.mxu0 %v4162_v0 }
  0x41   : > { %1085 = vperm.xlu0 %4004, %v1067_v10  }
  0x43   : > { %1000 = vmatpush1.bf16.msra.mxu0 %v4012_v13 }
  0x44   : > { %1001 = vmatprep.subr.bf16.mxu0 %v4162_v0 }
  0x45   : > { %1166 = vperm.xlu0 %4004, %v1160_v12  }
  0x47   : > { %1002 = vmatpush1.bf16.msra.mxu0 %v4013_v15 }
  0x48   : > { %1003 = vmatprep.subr.bf16.mxu0 %v4162_v0 }
  0x49   : > { %1171 = vperm.xlu0 %4004, %v1161_v14  }
  0x4b   : > { %1004 = vmatpush1.bf16.msra.mxu0 %v4014_v17 }
  0x4c   : > { %1005 = vmatprep.subr.bf16.mxu0 %v4162_v0 }
  0x4d   : > { %1181 = vperm.xlu0 %4004, %v1163_v16  }
  0x4f   : > { %1006 = vmatpush1.bf16.msra.mxu0 %v985_v19 }
  0x50   : > { %3781 = vmatprep.subr.bf16.mxu0 %v4163_v20 }
  0xb0   : > { %v881_v24 = vpop.permute.xlu0 %880 }
  0xb1   : > { %vm883_vm2 = vcmp.eq.s32.totalorder %v881_v24, %v875_v25  ;;  %vm882_vm6 = vcmp.eq.s32.totalorder %v881_v24, %v874_v22 }
  0xb4   : > { %v887_v27 = vpop.permute.xlu0 %886 }
  0xb5   : > { %vm889_vm1 = vcmp.eq.s32.totalorder %v887_v27, %v875_v25  ;;  %vm888_vm4 = vcmp.eq.s32.totalorder %v887_v27, %v874_v22 }
  0xb6   : > { %vm891_vm5 = vmor %vm883_vm2, %vm889_vm1 }
  0xb7   : > { %vm896_vm7 = vmor %vm891_vm5, %vm894_vm3 }
  0xb8   : > { %vm890_vm8 = vmor %vm882_vm6, %vm888_vm4  ;;  %v3519_v28 = vsel %vm896_vm7, 1.0, %v4163_v20  ;;  %v1071_v60 = vpop.permute.xlu0 %1070 }
  0xb9   : > { %v902_v29 = vpack.c.bf16 %v3519_v28, %v3519_v28  ;;  %vm3531_vm10 = vmpackc.low %vm890_vm8, %vm890_vm8 }
  0xbb   : > { %3530 = vmatprep.mubr.msk.bf16.mxu0 %vm979_vm9, %v902_v29 }
  0xbc   : > { %3532 = vmatmul.mubr.msk.bf16.vlgmr.msra.gmra.mrb[0].mxu0 %vm3531_vm10, %v4164_v30  ;;  %v1081_v61 = vpop.permute.xlu0 %1080 }
  0xbd   : > { %3783 = vmatprep.mubr.msk.bf16.mxu0 %vm4165_vm12, %v4163_v20 }
  0xc0   : > { %v1086_v3 = vpop.permute.xlu0 %1085 }
  0xc4   : > { %v1167_v13 = vpop.permute.xlu0 %1166 }
  0xc8   : > { %v1172_v27 = vpop.permute.xlu0 %1171 }
 0x18f   : > { %v1021_v31 = vpop.f32.mrb[0].mxu0 }
 0x190   : > { %v1023_v32 = vpop.f32.mrb[1].mxu0  ;;  %v1030_v33 = vsel %vm1029_vm11, %v1021_v31, 0.0 }
 0x191   : > { %1031 = vadd.xlane.f32.xlu1 %v1030_v33  ;;  %v1024_v34 = vpop.f32.mrb[2].mxu0  ;;  %v1182_v32 = vpop.permute.xlu0 %1181 }
 0x192   : > { %v1025_v35 = vpop.f32.mrb[3].mxu0 }
 0x21e   : > { %v1032_v36 = vpop.xlane.xlu1 %1031 }
 0x21f   : > { %v1034_v37 = vmul.f32 0.03125, %v1032_v36 }
 0x221   : > { %v1035_v38 = vsub.f32 %v1021_v31, %v1034_v37 }
 0x223   : > { %v1036_v39 = vmul.f32 %v1035_v38, %v1035_v38 }
 0x225   : > { %v1037_v40 = vsel %vm1029_vm11, %v1036_v39, 0.0 }
 0x226   : > { %1038 = vadd.xlane.f32.xlu1 %v1037_v40 }
 0x237   : > { %1075 = vperm.xlu1 %4005, %v1065_v42  }
 0x23b   : > { %1176 = vperm.xlu1 %4005, %v1162_v43  }
 0x2b3   : > { %v1039_v44 = vpop.xlane.xlu1 %1038 }
 0x2b4   : > { %v1040_v45 = vmul.f32 0.03125, %v1039_v44 }
 0x2b6   : > { %v1041_v46 = vadd.f32 1e-12, %v1040_v45 }
 0x2b7   : > { %v1076_v0 = vpop.permute.xlu1 %1075 }
 0x2b8   : > { %4048 = vrsqrt.f32 %v1041_v46 }
 0x2bb   : > { %v1177_v11 = vpop.permute.xlu1 %1176 }
 0x2c2   : > { %v4049_v47 = vpop.eup %4048 }
 0x2c3   : > { %v1043_v49 = vmul.f32 %v4049_v47, %v1035_v38 }
 0x2c5   : > { %v1050_v51 = vmul.f32 %v3533_v48, %v1043_v49 }
 0x2c7   : > { %v4439_v52 = vadd.f32 %v3534_v50, %v1050_v51 }
 0x2c9   : > { %v1059_v53 = vpack.c.bf16 %v4439_v52, %v4439_v52 }
 0x2cb   : > { %3955 = vmatprep.subr.msk.bf16.mxu1 %vm1029_vm11, %v1059_v53  ;;  %v1105_v54 = vsel %vm1029_vm11, %v1059_v53, 0 }
 0x2cc   : > { %3752 = vmatpush3.bf16.xpose.msra.mxu1 %v1105_v54 }
 0x2cd   : > { %3956 = vmatprep.subr.msk.bf16.mxu1 %vm1029_vm11, %v1059_v53 }
 0x2d3   : > { %3754 = vmatmul.mubr.msk.bf16.vlgmr.msra.gmra.mrb[0].mxu1 %vm1029_vm11, %v4017_v55 }
 0x2d4   : > { %3758 = vmatpush3.bf16.xpose.msra.mxu1 %v1105_v54  ;;  %3759 = vmatprep.mubr.msk.bf16.mxu1 %vm1029_vm11, %v4018_v56 }
 0x2d5   : > { %3957 = vmatprep.subr.msk.bf16.mxu1 %vm1029_vm11, %v1059_v53 }
 0x2db   : > { %3760 = vmatmul.mubr.msk.bf16.vlgmr.msra.gmra.mrb[4].mxu1 %vm1029_vm11, %v4019_v57 }
 0x2dc   : > { %3764 = vmatpush3.bf16.xpose.msra.mxu1 %v1105_v54  ;;  %3765 = vmatprep.mubr.msk.bf16.mxu1 %vm1029_vm11, %v4020_v58 }
 0x2dd   : > { %3769 = vmatprep.subr.bf16.mxu1 %v4163_v20 }
 0x2e3   : > { %3766 = vmatmul.mubr.msk.bf16.vlgmr.msra.gmra.mrb[8].mxu1 %vm1029_vm11, %v4021_v59 }
 0x2e4   : > { %3771 = vmatprep.mubr.msk.bf16.mxu1 %vm4165_vm12, %v4163_v20 }
 0x3a6   : > { %v3755_v62 = vpop.f32.mrb[0].mxu1 }
 0x3a7   : > { %v1141_v63 = vpop.f32.mrb[1].mxu1  ;;  %v1150_v8 = vadd.f32 %v3755_v62, %v1081_v61 }
 0x3a8   : > { %v1142_v1 = vadd.f32 %v1141_v63, %v1071_v60  ;;  %v3756_v2 = vpop.f32.mrb[2].mxu1 }
 0x3a9   : > { %v1144_v4 = vpop.f32.mrb[3].mxu1  ;;  %v1153_v6 = vadd.f32 %v3756_v2, %v1086_v3  ;;  %v1344_v16 = vpack.c.bf16 %v1150_v8, %v1150_v8 }
 0x3aa   : > { %v1342_v5 = vpack.c.bf16 %v1142_v1, %v1142_v1  ;;  %v1145_v7 = vadd.f32 %v1144_v4, %v1076_v0 }
 0x3ab   : > { %v1345_v10 = vpack.c.bf16 %v1153_v6, %v1153_v6 }
 0x3ac   : > { %v1343_v9 = vpack.c.bf16 %v1145_v7, %v1145_v7  ;;  %1354 = vxpose.xlu1.c.b16.start.end [1/1] (short) (narrow) %v1342_v5, 16  ;;  %v1254_v7 = vld [vmem:[%s4984_s1 + $0x8] sm:$0xff] }
 0x3ae   : > { %v3761_v12 = vpop.f32.mrb[4].mxu1  ;;  %1418 = vxpose.xlu0.c.b16.start.end [1/1] (short) (narrow) %v1343_v9, 16 }
 0x3af   : > { %v1243_v14 = vadd.f32 %v3761_v12, %v1177_v11  ;;  %v1234_v15 = vpop.f32.mrb[5].mxu1 }
 0x3b0   : > { %v1235_v17 = vadd.f32 %v1234_v15, %v1167_v13  ;;  %v3762_v18 = vpop.f32.mrb[6].mxu1  ;;  %1542 = vxpose.xlu1.c.b16.start.end [1/1] (short) (narrow) %v1345_v10, 16 }
 0x3b1   : > { %v1348_v19 = vpack.c.bf16 %v1243_v14, %v1243_v14  ;;  %v1237_v21 = vpop.f32.mrb[7].mxu1  ;;  %v1246_v34 = vadd.f32 %v3762_v18, %v1182_v32 }
 0x3b2   : > { %v1346_v22 = vpack.c.bf16 %v1235_v17, %v1235_v17  ;;  %1480 = vxpose.xlu0.c.b16.start.end [1/1] (short) (narrow) %v1344_v16, 16  ;;  %v1238_v29 = vadd.f32 %v1237_v21, %v1172_v27 }
 0x3b3   : > { %v1500_v23 = vsel %vm1374_vm13, %v1348_v19, 0  ;;  %v1349_v37 = vpack.c.bf16 %v1246_v34, %v1246_v34  ;;  %v1255_v34 = vld [vmem:[%s4984_s1 + $0x10] sm:$0xff] }
 0x3b4   : > { %v1376_v24 = vsel %vm1374_vm13, %v1346_v22, 0  ;;  %3782 = vmatpush3.bf16.msra.mxu0 %v1500_v23  ;;  %v1347_v31 = vpack.c.bf16 %v1238_v29, %v1238_v29 }
 0x3b5   : > { %3770 = vmatpush3.bf16.msra.mxu1 %v1376_v24  ;;  %3793 = vmatprep.subr.bf16.mxu0 %v4163_v20  ;;  %v1562_v39 = vsel %vm1374_vm13, %v1349_v37, 0 }
 0x3b6   : > { %3775 = vmatprep.subr.bf16.mxu1 %v4163_v20  ;;  %v4476_v25 = vpop.f32.mrb[8].mxu1  ;;  %v1438_v35 = vsel %vm1374_vm13, %v1347_v31, 0 }
 0x3b7   : > { %v4478_v26 = vpop.f32.mrb[9].mxu1 }
 0x3b8   : > { %v4480_v28 = vpop.f32.mrb[10].mxu1 }
 0x3b9   : > { %v4482_v30 = vpop.f32.mrb[11].mxu1 }
 0x412   : > { %v1362_v33 = vpop.trf.xlu1 }
 0x413   : > { %3772 = vmatmul.mubr.msk.bf16.vlgmr.msra.gmra.mrb[12].mxu1 %vm1370_vm14, %v1362_v33  ;;  %v1253_v33 = vld [vmem:[%s4984_s1] sm:$0xff] }
 0x414   : > { %3776 = vmatpush3.bf16.msra.mxu1 %v1438_v35  ;;  %v1426_v36 = vpop.trf.xlu0  ;;  %3777 = vmatprep.mubr.msk.bf16.mxu1 %vm4165_vm12, %v4163_v20  ;;  %v1256_v35 = vld [vmem:[%s4984_s1 + $0x18] sm:$0xff] }
 0x415   : > { %3787 = vmatprep.subr.bf16.mxu1 %v4163_v20 }
 0x416   : > { %v1550_v40 = vpop.trf.xlu1 }
 0x418   : > { %v1488_v38 = vpop.trf.xlu0 }
 0x419   : > { %3784 = vmatmul.mubr.msk.bf16.vlgmr.msra.gmra.mrb[4].mxu0 %vm1370_vm14, %v1488_v38 }
 0x41a   : > { %3795 = vmatprep.mubr.msk.bf16.mxu0 %vm4165_vm12, %v4163_v20 }
 0x41b   : > { %3778 = vmatmul.mubr.msk.bf16.vlgmr.msra.gmra.mrb[16].mxu1 %vm1370_vm14, %v1426_v36 }
 0x41c   : > { %3788 = vmatpush3.bf16.msra.mxu1 %v1562_v39  ;;  %3789 = vmatprep.mubr.msk.bf16.mxu1 %vm4165_vm12, %v4163_v20 }
 0x41d   : > { %3799 = vmatprep.subr.bf16.mxu1 %v4163_v20 }
 0x423   : > { %3790 = vmatmul.mubr.msk.bf16.vlgmr.msra.gmra.mrb[20].mxu1 %vm1370_vm14, %v1550_v40 }
 0x424   : > { %3801 = vmatprep.mubr.msk.bf16.mxu1 %vm4165_vm12, %v4163_v20 }
 0x4e6   : > { %v1412_v42 = vpop.f32.mrb[12].mxu1 }
 0x4e7   : > { %v1604_v43 = vmul.f32 0.35355338, %v1412_v42  ;;  %v3773_v44 = vpop.f32.mrb[13].mxu1 }
 0x4e8   : > { %v1415_v45 = vpop.f32.mrb[14].mxu1 }
 0x4e9   : > { %v3774_v46 = vpop.f32.mrb[15].mxu1  ;;  %v1614_v47 = vadd.f32 %v4504_v41, %v1604_v43 }
 0x4eb   : > { %v1618_v48 = vsel %vm1370_vm14, %v1614_v47, -inf }
 0x4ec   : > { %1619 = vmax.xlane.f32.xlu0 %v1618_v48  ;;  %v1536_v49 = vpop.f32.mrb[4].mxu0 }
 0x4ed   : > { %v1606_v50 = vmul.f32 0.35355338, %v1536_v49  ;;  %v3785_v51 = vpop.f32.mrb[5].mxu0 }
 0x4ee   : > { %v1474_v53 = vpop.f32.mrb[16].mxu1  ;;  %v1539_v54 = vpop.f32.mrb[6].mxu0 }
 0x4ef   : > { %v1605_v55 = vmul.f32 0.35355338, %v1474_v53  ;;  %v3779_v56 = vpop.f32.mrb[17].mxu1  ;;  %v3786_v57 = vpop.f32.mrb[7].mxu0  ;;  %v1616_v58 = vadd.f32 %v4504_v41, %v1606_v50 }
 0x4f0   : > { %v1477_v59 = vpop.f32.mrb[18].mxu1 }
 0x4f1   : > { %v3780_v60 = vpop.f32.mrb[19].mxu1  ;;  %v1624_v61 = vsel %vm1370_vm14, %v1616_v58, -inf  ;;  %v1615_v62 = vadd.f32 %v4504_v41, %v1605_v55 }
 0x4f2   : > { %1625 = vmax.xlane.f32.xlu0 %v1624_v61 }
 0x4f3   : > { %v1621_v63 = vsel %vm1370_vm14, %v1615_v62, -inf }
 0x4f4   : > { %1622 = vmax.xlane.f32.xlu1 %v1621_v63 }
 0x4f6   : > { %v1598_v0 = vpop.f32.mrb[20].mxu1 }
 0x4f7   : > { %v1607_v1 = vmul.f32 0.35355338, %v1598_v0  ;;  %v3791_v2 = vpop.f32.mrb[21].mxu1 }
 0x4f8   : > { %v1601_v3 = vpop.f32.mrb[22].mxu1 }
 0x4f9   : > { %v3792_v4 = vpop.f32.mrb[23].mxu1  ;;  %v1617_v5 = vadd.f32 %v4504_v41, %v1607_v1 }
 0x4fb   : > { %v1627_v6 = vsel %vm1370_vm14, %v1617_v5, -inf }
 0x4fc   : > { %1628 = vmax.xlane.f32.xlu1 %v1627_v6 }
 0x50d   : > { %1264 = vperm.xlu1 %4005, %v1254_v7  }
 0x579   : > { %v1620_v8 = vpop.xlane.xlu0 %1619 }
 0x57a   : > { %v1630_v9 = vsub.f32 %v1614_v47, %v1620_v8 }
 0x57c   : > { %v1634_v12 = vmul.f32 1.442695, %v1630_v9 }
 0x57f   : > { %v1626_v10 = vpop.xlane.xlu0 %1625 }
 0x580   : > { %v1632_v11 = vsub.f32 %v1616_v58, %v1626_v10 }
 0x581   : > { %v1623_v13 = vpop.xlane.xlu1 %1622 }
 0x582   : > { %v1638_v14 = vmul.f32 1.442695, %v1632_v11  ;;  %v1631_v15 = vsub.f32 %v1615_v62, %v1623_v13 }
 0x584   : > { %4050 = vpow2.f32 %v1638_v14  ;;  %v1636_v16 = vmul.f32 1.442695, %v1631_v15 }
 0x585   : > { %4052 = vpow2.f32 %v1634_v12 }
 0x586   : > { %4054 = vpow2.f32 %v1636_v16 }
 0x589   : > { %v1629_v17 = vpop.xlane.xlu1 %1628 }
 0x58a   : > { %v1633_v18 = vsub.f32 %v1617_v5, %v1629_v17 }
 0x58c   : > { %v1640_v19 = vmul.f32 1.442695, %v1633_v18 }
 0x58d   : > { %v1265_v36 = vpop.permute.xlu1 %1264 }
 0x58e   : > { %v4051_v21 = vpop.eup %4050  ;;  %4056 = vpow2.f32 %v1640_v19  ;;  %v1331_v51 = vadd.f32 %v4482_v30, %v1265_v36 }
 0x58f   : > { %v4053_v22 = vpop.eup %4052  ;;  %v1648_v23 = vsel %vm1370_vm14, %v4051_v21, 0.0 }
 0x590   : > { %v4055_v24 = vpop.eup %4054  ;;  %1649 = vadd.xlane.f32.xlu0 %v1648_v23  ;;  %v1642_v29 = vsel %vm1370_vm14, %v4053_v22, 0.0  ;;  %v1351_v58 = vpack.c.bf16 %v1331_v51, %v1331_v51 }
 0x591   : > { %v1645_v27 = vsel %vm1370_vm14, %v4055_v24, 0.0 }
 0x592   : > { %1646 = vadd.xlane.f32.xlu1 %v1645_v27 }
 0x594   : > { %1643 = vadd.xlane.f32.xlu0 %v1642_v29 }
 0x598   : > { %v4057_v31 = vpop.eup %4056 }
 0x599   : > { %v1651_v32 = vsel %vm1370_vm14, %v4057_v31, 0.0 }
 0x59a   : > { %1652 = vadd.xlane.f32.xlu1 %v1651_v32 }
 0x5aa   : > { %1259 = vperm.xlu0 %4004, %v1253_v33  }
 0x5ab   : > { %1269 = vperm.xlu1 %4005, %v1255_v34  }
 0x5ae   : > { %1274 = vperm.xlu0 %4004, %v1256_v35  }
 0x61d   : > { %v1650_v37 = vpop.xlane.xlu0 %1649 }
 0x61f   : > { %v1647_v38 = vpop.xlane.xlu1 %1646 }
 0x620   : > { %4058 = vrcp.f32 %v1647_v38 }
 0x621   : > { %v1644_v39 = vpop.xlane.xlu0 %1643 }
 0x622   : > { %4060 = vrcp.f32 %v1644_v39 }
 0x623   : > { %4062 = vrcp.f32 %v1650_v37 }
 0x627   : > { %v1653_v40 = vpop.xlane.xlu1 %1652 }
 0x628   : > { %4064 = vrcp.f32 %v1653_v40 }
 0x629   : > { %v1260_v50 = vpop.permute.xlu0 %1259 }
 0x62a   : > { %v4059_v42 = vpop.eup %4058  ;;  %v1328_v56 = vadd.f32 %v4478_v26, %v1260_v50 }
 0x62b   : > { %v1659_v43 = vmul.f32 %v4059_v42, %v4055_v24  ;;  %v1270_v63 = vpop.permute.xlu1 %1269  ;;  %v3556_v24 = vld [vmem:[%s4910_s13] ss:$0 sm:$0xff] }
 0x62c   : > { %v4061_v44 = vpop.eup %4060  ;;  %v1350_v62 = vpack.c.bf16 %v1328_v56, %v1328_v56  ;;  %v1336_v1 = vadd.f32 %v4476_v25, %v1270_v63  ;;  %v4023_v25 = vld [vmem:[%s4985_s0 + $0x8] sm:$0xff]   ;;  %v4024_v42 = vld [vmem:[%s4913_s16] sm:$0xff]   ;;  %v4028_v56 = vld [vmem:[%s4915_s18 + $0x10] sm:$0xff]  }
 0x62d   : > { %v1663_v45 = vpack.c.bf16 %v1659_v43, %v1659_v43  ;;  %v1658_v46 = vmul.f32 %v4061_v44, %v4053_v22  ;;  %v4063_v47 = vpop.eup %4062  ;;  %v1275_v61 = vpop.permute.xlu0 %1274  ;;  %v4025_v43 = vld [vmem:[%s4913_s16 + $0x8] sm:$0xff]  }
 0x62e   : > { %v1660_v54 = vmul.f32 %v4063_v47, %v4051_v21  ;;  %v1339_v0 = vadd.f32 %v4480_v28, %v1275_v61  ;;  %v1352_v3 = vpack.c.bf16 %v1336_v1, %v1336_v1  ;;  %v4022_v28 = vld [vmem:[%s4985_s0] sm:$0xff]  }
 0x62f   : > { %v1716_v48 = vsel %vm1370_vm14, %v1663_v45, 0  ;;  %v1662_v49 = vpack.c.bf16 %v1658_v46, %v1658_v46  ;;  %v3560_v47 = vld [vmem:[%s4911_s14] ss:$0 sm:$0xff] }
 0x630   : > { %3800 = vmatpush3.bf16.xpose.msra.mxu1 %v1716_v48  ;;  %v1664_v60 = vpack.c.bf16 %v1660_v54, %v1660_v54  ;;  %v1353_v2 = vpack.c.bf16 %v1339_v0, %v1339_v0  ;;  %v4026_v54 = vld [vmem:[%s4915_s18] sm:$0xff]  }
 0x631   : > { %v1670_v53 = vsel %vm1370_vm14, %v1662_v49, 0  ;;  %3811 = vmatprep.subr.bf16.mxu1 %v4163_v20  ;;  %v3561_v49 = vld [vmem:[%s4912_s15] ss:$0 sm:$0xff] }
 0x632   : > { %v4065_v55 = vpop.eup %4064  ;;  %3794 = vmatpush3.bf16.xpose.msra.mxu0 %v1670_v53  ;;  %v1762_v26 = vsel %vm1370_vm14, %v1664_v60, 0 }
 0x633   : > { %v1661_v57 = vmul.f32 %v4065_v55, %v4057_v31  ;;  %3805 = vmatprep.subr.bf16.mxu0 %v4163_v20  ;;  %v4027_v55 = vld [vmem:[%s4915_s18 + $0x8] sm:$0xff]  }
 0x635   : > { %v1665_v59 = vpack.c.bf16 %v1661_v57, %v1661_v57  ;;  %v4029_v57 = vld [vmem:[%s4915_s18 + $0x18] sm:$0xff]  }
 0x637   : > { %3802 = vmatmul.mubr.msk.bf16.vlgmr.msra.gmra.mrb[24].mxu1 %vm1370_vm14, %v1351_v58  ;;  %v1808_v30 = vsel %vm1370_vm14, %v1665_v59, 0  ;;  %v3562_v58 = vld [vmem:[%s4914_s17] ss:$0 sm:$0xff] }
 0x638   : > { %3812 = vmatpush3.bf16.xpose.msra.mxu1 %v1808_v30  ;;  %3813 = vmatprep.mubr.msk.bf16.mxu1 %vm4165_vm12, %v4163_v20 }
 0x639   : > { %3796 = vmatmul.mubr.msk.bf16.vlgmr.msra.gmra.mrb[8].mxu0 %vm1370_vm14, %v1350_v62  ;;  %3825 = vmatprep.subr.bf16.mxu1 %v4163_v20 }
 0x63a   : > { %3806 = vmatpush3.bf16.xpose.msra.mxu0 %v1762_v26  ;;  %3807 = vmatprep.mubr.msk.bf16.mxu0 %vm4165_vm12, %v4163_v20 }
 0x63b   : > { %3817 = vmatprep.subr.bf16.mxu0 %v4163_v20 }
 0x63f   : > { %3814 = vmatmul.mubr.msk.bf16.vlgmr.msra.gmra.mrb[28].mxu1 %vm1370_vm14, %v1353_v2 }
 0x640   : > { %3829 = vmatprep.mubr.msk.bf16.mxu1 %vm4165_vm12, %v4163_v20  ;;  %3826 = vmatpush3.bf16.msra.mxu1 %v4024_v42  ;;  %v4032_v42 = vld [vmem:[%s4981_s2 + $0x10] sm:$0xff]  }
 0x641   : > { %3808 = vmatmul.mubr.msk.bf16.vlgmr.msra.gmra.mrb[12].mxu0 %vm1370_vm14, %v1352_v3  ;;  %3827 = vmatprep.subr.bf16.mxu1 %v4163_v20 }
 0x642   : > { %3821 = vmatprep.mubr.msk.bf16.mxu0 %vm4165_vm12, %v4163_v20  ;;  %3818 = vmatpush3.bf16.msra.mxu0 %v4022_v28  ;;  %v3566_v28 = vld [vmem:[%s4916_s19] ss:$0 sm:$0xff] }
 0x643   : > { %3819 = vmatprep.subr.bf16.mxu0 %v4163_v20 }
 0x644   : > { %3828 = vmatpush3.bf16.msra.mxu1 %v4025_v43  ;;  %v4033_v43 = vld [vmem:[%s4981_s2 + $0x18] sm:$0xff]   ;;  %s3670_s2 = sshll.u32 %s4333_s3, 7  ;;  %s4098_s3 = scalar_lea.vmem %s4857_s9, 128 }
 0x645   : > { %p4099_p11 = scmp.ne.s32.totalorder %s4857_s9, %s4098_s3  ;;  %p4106_p1 = scmp.lt.s32.totalorder %s4104_s12, %s4098_s3 }
 0x646   : > { %3820 = vmatpush3.bf16.msra.mxu0 %v4023_v25 }
 0x647   : > { %3833 = vmatprep.subr.bf16.mxu0 %v4163_v20  ;;  %p4100_p12 = pnand %p4099_p11, %p4350_p5  ;;  %p4107_p2 = por %p4106_p1, %p4105_p0 }
 0x649   : > { %p4101_p13 = pneg %p4100_p12 }
 0x64b   : > { %p4108_p3 = pnand %p4107_p2, %p4101_p13 }
 0x70a   : > { %v1752_v4 = vpop.f32.mrb[24].mxu1 }
 0x70b   : > { %v3803_v5 = vpop.f32.mrb[25].mxu1 }
 0x70c   : > { %v1706_v6 = vpop.f32.mrb[8].mxu0  ;;  %v1755_v7 = vpop.f32.mrb[26].mxu1 }
 0x70d   : > { %v1850_v8 = vpack.c.bf16 %v1752_v4, %v1706_v6  ;;  %v3797_v9 = vpop.f32.mrb[9].mxu0  ;;  %v3804_v10 = vpop.f32.mrb[27].mxu1 }
 0x70e   : > { %v1709_v11 = vpop.f32.mrb[10].mxu0  ;;  %v3578_v10 = vld [vmem:[%s4976_s25 + $0x20] sm:$0xff] }
 0x70f   : > { %1863 = vxpose.xlu1.c.b16.start [1/2] (short) (narrow) %v1850_v8, 16  ;;  %v3798_v12 = vpop.f32.mrb[11].mxu0  ;;  %v3580_v11 = vld [vmem:[%s4976_s25 + $0x30] sm:$0xff] }
 0x710   : > { %v3581_v12 = vld [vmem:[%s4976_s25 + $0x38] sm:$0xff] }
 0x712   : > { %v1844_v13 = vpop.f32.mrb[28].mxu1 }
 0x713   : > { %v3815_v14 = vpop.f32.mrb[29].mxu1 }
 0x714   : > { %v1798_v15 = vpop.f32.mrb[12].mxu0  ;;  %v1847_v16 = vpop.f32.mrb[30].mxu1  ;;  %v3593_v14 = vld [vmem:[%s4977_s11 + $0x38] sm:$0xff] }
 0x715   : > { %v1851_v17 = vpack.c.bf16 %v1844_v13, %v1798_v15  ;;  %v3809_v18 = vpop.f32.mrb[13].mxu0  ;;  %v3816_v19 = vpop.f32.mrb[31].mxu1  ;;  %v3591_v13 = vld [vmem:[%s4977_s11 + $0x28] sm:$0xff] }
 0x716   : > { %v1801_v21 = vpop.f32.mrb[14].mxu0 }
 0x717   : > { %v3810_v22 = vpop.f32.mrb[15].mxu0  ;;  %1864 = vxpose.xlu1.c.b16.end [2/2] (short) (narrow) %v1851_v17, 16  ;;  %v3579_v21 = vld [vmem:[%s4976_s25 + $0x28] sm:$0xff] }
 0x718   : > { %v3590_v22 = vld [vmem:[%s4977_s11 + $0x20] sm:$0xff] }
 0x779   : > { %v1871_v23 = vpop.trf.xlu1 }
 0x77a   : > { %3822 = vmatmul.mubr.msk.bf16.vlgmr.msra.gmra.mrb[16].mxu0 %vm1029_vm11, %v1871_v23  ;;  %v3592_v23 = vld [vmem:[%s4977_s11 + $0x30] sm:$0xff] }
 0x77b   : > { %3841 = vmatprep.mubr.msk.bf16.mxu0 %vm4165_vm12, %v4163_v20  ;;  %3834 = vmatpush3.bf16.msra.mxu0 %v4026_v54 }
 0x77c   : > { %3835 = vmatprep.subr.bf16.mxu0 %v4163_v20 }
 0x77f   : > { %3836 = vmatpush3.bf16.msra.mxu0 %v4027_v55 }
 0x780   : > { %3837 = vmatprep.subr.bf16.mxu0 %v4163_v20 }
 0x783   : > { %3838 = vmatpush3.bf16.msra.mxu0 %v4028_v56 }
 0x784   : > { %3839 = vmatprep.subr.bf16.mxu0 %v4163_v20 }
 0x787   : > { %3840 = vmatpush3.bf16.msra.mxu0 %v4029_v57 }
 0x84d   : > { %v1928_v27 = vpop.f32.mrb[16].mxu0 }
 0x84e   : > { %v1929_v29 = vadd.f32 %v3556_v24, %v1928_v27  ;;  %v3823_v31 = vpop.f32.mrb[17].mxu0  ;;  %v4030_v24 = vld [vmem:[%s4978_s28 + $0x10] sm:$0xff]  }
 0x84f   : > { %v1931_v32 = vpop.f32.mrb[18].mxu0 }
 0x850   : > { %v3824_v33 = vpop.f32.mrb[19].mxu0  ;;  %v1934_v34 = vadd.f32 %v1929_v29, %v4439_v52 }
 0x851   : > { %v3572_v33 = vld [vmem:[%s4917_s20] ss:$0 sm:$0xff] }
 0x852   : > { %v1937_v35 = vsel %vm1029_vm11, %v1934_v34, 0.0 }
 0x853   : > { %1938 = vadd.xlane.f32.xlu0 %v1937_v35  ;;  %v3573_v35 = vld [vmem:[%s4918_s21] ss:$0 sm:$0xff] }
 0x8e0   : > { %v1939_v36 = vpop.xlane.xlu0 %1938 }
 0x8e1   : > { %v1940_v37 = vmul.f32 0.03125, %v1939_v36 }
 0x8e3   : > { %v1941_v38 = vsub.f32 %v1934_v34, %v1940_v37 }
 0x8e5   : > { %v1942_v39 = vmul.f32 %v1941_v38, %v1941_v38 }
 0x8e7   : > { %v1943_v40 = vsel %vm1029_vm11, %v1942_v39, 0.0 }
 0x8e8   : > { %1944 = vadd.xlane.f32.xlu0 %v1943_v40  ;;  %v4031_v40 = vld [vmem:[%s4978_s28 + $0x18] sm:$0xff]  }
 0x975   : > { %v1945_v52 = vpop.xlane.xlu0 %1944 }
 0x976   : > { %v1946_v44 = vmul.f32 0.03125, %v1945_v52  ;;  %v4034_v52 = vld [vmem:[%s4982_s29 + $0x10] sm:$0xff]  }
 0x978   : > { %v1947_v45 = vadd.f32 1e-12, %v1946_v44  ;;  %v4035_v44 = vld [vmem:[%s4982_s29 + $0x18] sm:$0xff]  }
 0x97a   : > { %4066 = vrsqrt.f32 %v1947_v45 }
 0x984   : > { %v4067_v46 = vpop.eup %4066 }
 0x985   : > { %v1949_v48 = vmul.f32 %v4067_v46, %v1941_v38 }
 0x987   : > { %v1956_v50 = vmul.f32 %v3560_v47, %v1949_v48 }
 0x989   : > { %v1963_v51 = vadd.f32 %v3561_v49, %v1956_v50 }
 0x98b   : > { %v1964_v53 = vpack.c.bf16 %v1963_v51, %v1963_v51 }
 0x98d   : > { %3830 = vmatmul.mubr.msk.bf16.vlgmr.msra.gmra.mrb[32].mxu1 %vm1029_vm11, %v1964_v53 }
 0x98e   : > { %3847 = vmatprep.mubr.msk.bf16.mxu1 %vm1029_vm11, %v4030_v24 }
 0xa60   : > { %v2025_v59 = vpop.f32.mrb[32].mxu1 }
 0xa61   : > { %v2026_v60 = vadd.f32 %v3562_v58, %v2025_v59  ;;  %v3831_v61 = vpop.f32.mrb[33].mxu1 }
 0xa62   : > { %v2028_v62 = vpop.f32.mrb[34].mxu1 }
 0xa63   : > { %v2032_v30 = vmul.f32 0.70710677, %v2026_v60  ;;  %v3832_v63 = vpop.f32.mrb[35].mxu1  ;;  %v2031_v26 = vmul.f32 0.5, %v2026_v60 }
 0xa65   : > { %4068 = verf.f32 %v2032_v30 }
 0xa6f   : > { %v4069_v0 = vpop.eup %4068 }
 0xa70   : > { %v2034_v1 = vadd.f32 1.0, %v4069_v0 }
 0xa72   : > { %v2035_v2 = vmul.f32 %v2034_v1, %v2031_v26 }
 0xa74   : > { %v2036_v3 = vpack.c.bf16 %v2035_v2, %v2035_v2 }
 0xa76   : > { %3842 = vmatmul.mubr.msk.bf16.vlgmr.msra.gmra.mrb[20].mxu0 %vm2076_vm15, %v2036_v3 }
 0xa77   : > { %3859 = vmatprep.mubr.msk.bf16.mxu0 %vm1029_vm11, %v4034_v52 }
 0xb49   : > { %v2114_v25 = vpop.f32.mrb[20].mxu0 }
 0xb4a   : > { %v2115_v4 = vadd.f32 %v3566_v28, %v2114_v25  ;;  %v3843_v5 = vpop.f32.mrb[21].mxu0 }
 0xb4b   : > { %v2117_v6 = vpop.f32.mrb[22].mxu0 }
 0xb4c   : > { %v3844_v7 = vpop.f32.mrb[23].mxu0  ;;  %v2120_v8 = vadd.f32 %v2115_v4, %v1963_v51 }
 0xb4e   : > { %v2123_v9 = vsel %vm1029_vm11, %v2120_v8, 0.0 }
 0xb4f   : > { %2124 = vadd.xlane.f32.xlu0 %v2123_v9 }
 0xb65   : > { %2163 = vperm.xlu0 %4004, %v3578_v10  }
 0xb69   : > { %2173 = vperm.xlu0 %4004, %v3580_v11  }
 0xb6d   : > { %2178 = vperm.xlu0 %4004, %v3581_v12  }
 0xb71   : > { %2266 = vperm.xlu0 %4004, %v3591_v13  }
 0xb75   : > { %2276 = vperm.xlu0 %4004, %v3593_v14  }
 0xbdc   : > { %v2125_v15 = vpop.xlane.xlu0 %2124 }
 0xbdd   : > { %v2126_v16 = vmul.f32 0.03125, %v2125_v15 }
 0xbdf   : > { %v2127_v17 = vsub.f32 %v2120_v8, %v2126_v16 }
 0xbe1   : > { %v2128_v18 = vmul.f32 %v2127_v17, %v2127_v17 }
 0xbe3   : > { %v2129_v19 = vsel %vm1029_vm11, %v2128_v18, 0.0 }
 0xbe4   : > { %2130 = vadd.xlane.f32.xlu1 %v2129_v19  ;;  %v2164_v45 = vpop.permute.xlu0 %2163 }
 0xbe8   : > { %v2174_v46 = vpop.permute.xlu0 %2173 }
 0xbec   : > { %v2179_v49 = vpop.permute.xlu0 %2178 }
 0xbf0   : > { %v2267_v1 = vpop.permute.xlu0 %2266 }
 0xbf4   : > { %v2277_v9 = vpop.permute.xlu0 %2276 }
 0xbf5   : > { %2168 = vperm.xlu1 %4005, %v3579_v21  }
 0xbf9   : > { %2261 = vperm.xlu1 %4005, %v3590_v22  }
 0xbfd   : > { %2271 = vperm.xlu1 %4005, %v3592_v23  }
 0xc71   : > { %v2131_v27 = vpop.xlane.xlu1 %2130 }
 0xc72   : > { %v2132_v29 = vmul.f32 0.03125, %v2131_v27 }
 0xc74   : > { %v2133_v31 = vadd.f32 1e-12, %v2132_v29 }
 0xc75   : > { %v2169_v53 = vpop.permute.xlu1 %2168 }
 0xc76   : > { %4070 = vrsqrt.f32 %v2133_v31 }
 0xc79   : > { %v2262_v62 = vpop.permute.xlu1 %2261 }
 0xc7d   : > { %v2272_v6 = vpop.permute.xlu1 %2271 }
 0xc80   : > { %v4071_v32 = vpop.eup %4070 }
 0xc81   : > { %v2135_v34 = vmul.f32 %v4071_v32, %v2127_v17 }
 0xc83   : > { %v2142_v36 = vmul.f32 %v3572_v33, %v2135_v34 }
 0xc85   : > { %v4643_v37 = vadd.f32 %v3573_v35, %v2142_v36 }
 0xc87   : > { %v2150_v38 = vpack.c.bf16 %v4643_v37, %v4643_v37 }
 0xc89   : > { %3958 = vmatprep.subr.msk.bf16.mxu1 %vm1029_vm11, %v2150_v38  ;;  %3960 = vmatprep.subr.msk.bf16.mxu0 %vm1029_vm11, %v2150_v38  ;;  %v2198_v39 = vsel %vm1029_vm11, %v2150_v38, 0 }
 0xc8a   : > { %3846 = vmatpush3.bf16.xpose.msra.mxu1 %v2198_v39  ;;  %3858 = vmatpush3.bf16.xpose.msra.mxu0 %v2198_v39 }
 0xc8b   : > { %3959 = vmatprep.subr.msk.bf16.mxu1 %vm1029_vm11, %v2150_v38  ;;  %3869 = vmatprep.subr.bf16.mxu0 %v4163_v20 }
 0xc91   : > { %3848 = vmatmul.mubr.msk.bf16.vlgmr.msra.gmra.mrb[36].mxu1 %vm1029_vm11, %v4031_v40  ;;  %3860 = vmatmul.mubr.msk.bf16.vlgmr.msra.gmra.mrb[24].mxu0 %vm1029_vm11, %v4035_v44 }
 0xc92   : > { %3852 = vmatpush3.bf16.xpose.msra.mxu1 %v2198_v39  ;;  %3853 = vmatprep.mubr.msk.bf16.mxu1 %vm1029_vm11, %v4032_v42 }
 0xc93   : > { %3863 = vmatprep.subr.bf16.mxu1 %v4163_v20  ;;  %3871 = vmatprep.mubr.msk.bf16.mxu0 %vm4165_vm12, %v4163_v20 }
 0xc99   : > { %3854 = vmatmul.mubr.msk.bf16.vlgmr.msra.gmra.mrb[40].mxu1 %vm1029_vm11, %v4033_v43 }
 0xc9a   : > { %3865 = vmatprep.mubr.msk.bf16.mxu1 %vm4165_vm12, %v4163_v20 }
 0xd64   : > { %v3849_v47 = vpop.f32.mrb[36].mxu1  ;;  %v4681_v8 = vpop.f32.mrb[24].mxu0 }
 0xd65   : > { %v2234_v48 = vpop.f32.mrb[37].mxu1  ;;  %v2243_v58 = vadd.f32 %v3849_v47, %v2174_v46  ;;  %v4683_v10 = vpop.f32.mrb[25].mxu0 }
 0xd66   : > { %v2235_v50 = vadd.f32 %v2234_v48, %v2164_v45  ;;  %v3850_v51 = vpop.f32.mrb[38].mxu1  ;;  %v4685_v12 = vpop.f32.mrb[26].mxu0 }
 0xd67   : > { %v2237_v54 = vpop.f32.mrb[39].mxu1  ;;  %v2246_v56 = vadd.f32 %v3850_v51, %v2179_v49  ;;  %v2441_v63 = vpack.c.bf16 %v2243_v58, %v2243_v58  ;;  %v4687_v13 = vpop.f32.mrb[27].mxu0  ;;  %v3602_v58 = vld [vmem:[%s4984_s1 + $0x20] sm:$0xff] }
 0xd68   : > { %v2439_v55 = vpack.c.bf16 %v2235_v50, %v2235_v50  ;;  %v2238_v57 = vadd.f32 %v2237_v54, %v2169_v53 }
 0xd69   : > { %v2442_v60 = vpack.c.bf16 %v2246_v56, %v2246_v56 }
 0xd6a   : > { %v2440_v59 = vpack.c.bf16 %v2238_v57, %v2238_v57  ;;  %2451 = vxpose.xlu1.c.b16.start.end [1/1] (short) (narrow) %v2439_v55, 16  ;;  %v3603_v57 = vld [vmem:[%s4984_s1 + $0x28] sm:$0xff] }
 0xd6c   : > { %v3855_v61 = vpop.f32.mrb[40].mxu1  ;;  %2513 = vxpose.xlu0.c.b16.start.end [1/1] (short) (narrow) %v2440_v59, 16 }
 0xd6d   : > { %v2329_v30 = vpop.f32.mrb[41].mxu1  ;;  %v2338_v7 = vadd.f32 %v3855_v61, %v2272_v6 }
 0xd6e   : > { %v2330_v0 = vadd.f32 %v2329_v30, %v2262_v62  ;;  %v3856_v26 = vpop.f32.mrb[42].mxu1  ;;  %2637 = vxpose.xlu1.c.b16.start.end [1/1] (short) (narrow) %v2442_v60, 16 }
 0xd6f   : > { %v2332_v2 = vpop.f32.mrb[43].mxu1  ;;  %v2341_v11 = vadd.f32 %v3856_v26, %v2277_v9  ;;  %v2445_v14 = vpack.c.bf16 %v2338_v7, %v2338_v7 }
 0xd70   : > { %v2443_v3 = vpack.c.bf16 %v2330_v0, %v2330_v0  ;;  %v2333_v28 = vadd.f32 %v2332_v2, %v2267_v1  ;;  %2575 = vxpose.xlu0.c.b16.start.end [1/1] (short) (narrow) %v2441_v63, 16 }
 0xd71   : > { %v2446_v15 = vpack.c.bf16 %v2341_v11, %v2341_v11  ;;  %v2595_v17 = vsel %vm1374_vm13, %v2445_v14, 0  ;;  %v3604_v14 = vld [vmem:[%s4984_s1 + $0x30] sm:$0xff] }
 0xd72   : > { %v2471_v25 = vsel %vm1374_vm13, %v2443_v3, 0  ;;  %v2444_v4 = vpack.c.bf16 %v2333_v28, %v2333_v28 }
 0xd73   : > { %3864 = vmatpush3.bf16.msra.mxu1 %v2471_v25  ;;  %v2657_v19 = vsel %vm1374_vm13, %v2446_v15, 0  ;;  %v3605_v15 = vld [vmem:[%s4984_s1 + $0x38] sm:$0xff] }
 0xd74   : > { %v2533_v5 = vsel %vm1374_vm13, %v2444_v4, 0  ;;  %3875 = vmatprep.subr.bf16.mxu1 %v4163_v20 }
 0xd75   : > { %3870 = vmatpush3.bf16.msra.mxu0 %v2533_v5 }
 0xd76   : > { %3881 = vmatprep.subr.bf16.mxu0 %v4163_v20 }
 0xdd0   : > { %v2459_v16 = vpop.trf.xlu1 }
 0xdd1   : > { %3866 = vmatmul.mubr.msk.bf16.vlgmr.msra.gmra.mrb[44].mxu1 %vm1370_vm14, %v2459_v16 }
 0xdd2   : > { %3876 = vmatpush3.bf16.msra.mxu1 %v2595_v17  ;;  %v2521_v18 = vpop.trf.xlu0  ;;  %3877 = vmatprep.mubr.msk.bf16.mxu1 %vm4165_vm12, %v4163_v20 }
 0xdd3   : > { %3872 = vmatmul.mubr.msk.bf16.vlgmr.msra.gmra.mrb[28].mxu0 %vm1370_vm14, %v2521_v18  ;;  %3887 = vmatprep.subr.bf16.mxu1 %v4163_v20 }
 0xdd4   : > { %3882 = vmatpush3.bf16.msra.mxu0 %v2657_v19  ;;  %3883 = vmatprep.mubr.msk.bf16.mxu0 %vm4165_vm12, %v4163_v20  ;;  %v2645_v22 = vpop.trf.xlu1 }
 0xdd5   : > { %3893 = vmatprep.subr.bf16.mxu0 %v4163_v20 }
 0xdd6   : > { %v2583_v21 = vpop.trf.xlu0 }
 0xdd9   : > { %3878 = vmatmul.mubr.msk.bf16.vlgmr.msra.gmra.mrb[48].mxu1 %vm1370_vm14, %v2583_v21 }
 0xdda   : > { %3889 = vmatprep.mubr.msk.bf16.mxu1 %vm4165_vm12, %v4163_v20 }
 0xddb   : > { %3884 = vmatmul.mubr.msk.bf16.vlgmr.msra.gmra.mrb[32].mxu0 %vm1370_vm14, %v2645_v22 }
 0xddc   : > { %3895 = vmatprep.mubr.msk.bf16.mxu0 %vm4165_vm12, %v4163_v20 }
 0xea4   : > { %v2507_v23 = vpop.f32.mrb[44].mxu1 }
 0xea5   : > { %v2699_v24 = vmul.f32 0.35355338, %v2507_v23  ;;  %v3867_v27 = vpop.f32.mrb[45].mxu1 }
 0xea6   : > { %v2510_v29 = vpop.f32.mrb[46].mxu1  ;;  %v2569_v31 = vpop.f32.mrb[28].mxu0 }
 0xea7   : > { %v2700_v32 = vmul.f32 0.35355338, %v2569_v31  ;;  %v3868_v33 = vpop.f32.mrb[47].mxu1  ;;  %v3873_v34 = vpop.f32.mrb[29].mxu0  ;;  %v2703_v35 = vadd.f32 %v4504_v41, %v2699_v24 }
 0xea8   : > { %v2572_v36 = vpop.f32.mrb[30].mxu0 }
 0xea9   : > { %v3874_v38 = vpop.f32.mrb[31].mxu0  ;;  %v2707_v39 = vsel %vm1370_vm14, %v2703_v35, -inf  ;;  %v2704_v40 = vadd.f32 %v4504_v41, %v2700_v32 }
 0xeaa   : > { %2708 = vmax.xlane.f32.xlu0 %v2707_v39 }
 0xeab   : > { %v2710_v42 = vsel %vm1370_vm14, %v2704_v40, -inf }
 0xeac   : > { %2711 = vmax.xlane.f32.xlu1 %v2710_v42  ;;  %v2631_v43 = vpop.f32.mrb[48].mxu1 }
 0xead   : > { %v2701_v52 = vmul.f32 0.35355338, %v2631_v43  ;;  %v3879_v44 = vpop.f32.mrb[49].mxu1 }
 0xeae   : > { %v2634_v45 = vpop.f32.mrb[50].mxu1  ;;  %v2693_v46 = vpop.f32.mrb[32].mxu0 }
 0xeaf   : > { %v2702_v47 = vmul.f32 0.35355338, %v2693_v46  ;;  %v3880_v48 = vpop.f32.mrb[51].mxu1  ;;  %v3885_v49 = vpop.f32.mrb[33].mxu0  ;;  %v2705_v50 = vadd.f32 %v4504_v41, %v2701_v52 }
 0xeb0   : > { %v2696_v51 = vpop.f32.mrb[34].mxu0 }
 0xeb1   : > { %v3886_v53 = vpop.f32.mrb[35].mxu0  ;;  %v2713_v54 = vsel %vm1370_vm14, %v2705_v50, -inf  ;;  %v2706_v55 = vadd.f32 %v4504_v41, %v2702_v47 }
 0xeb2   : > { %2714 = vmax.xlane.f32.xlu0 %v2713_v54 }
 0xeb3   : > { %v2716_v56 = vsel %vm1370_vm14, %v2706_v55, -inf }
 0xeb4   : > { %2717 = vmax.xlane.f32.xlu1 %v2716_v56 }
 0xec5   : > { %2361 = vperm.xlu1 %4005, %v3603_v57  }
 0xec8   : > { %2356 = vperm.xlu0 %4004, %v3602_v58  }
 0xf37   : > { %v2709_v59 = vpop.xlane.xlu0 %2708 }
 0xf38   : > { %v2719_v60 = vsub.f32 %v2703_v35, %v2709_v59 }
 0xf39   : > { %v2712_v61 = vpop.xlane.xlu1 %2711 }
 0xf3a   : > { %v2723_v62 = vmul.f32 1.442695, %v2719_v60  ;;  %v2720_v30 = vsub.f32 %v2704_v40, %v2712_v61 }
 0xf3c   : > { %4072 = vpow2.f32 %v2723_v62  ;;  %v2725_v41 = vmul.f32 1.442695, %v2720_v30 }
 0xf3e   : > { %4074 = vpow2.f32 %v2725_v41 }
 0xf3f   : > { %v2715_v63 = vpop.xlane.xlu0 %2714 }
 0xf40   : > { %v2721_v0 = vsub.f32 %v2705_v50, %v2715_v63 }
 0xf41   : > { %v2718_v26 = vpop.xlane.xlu1 %2717 }
 0xf42   : > { %v2727_v1 = vmul.f32 1.442695, %v2721_v0  ;;  %v2722_v2 = vsub.f32 %v2706_v55, %v2718_v26 }
 0xf44   : > { %4076 = vpow2.f32 %v2727_v1  ;;  %v2729_v3 = vmul.f32 1.442695, %v2722_v2 }
 0xf45   : > { %v2362_v17 = vpop.permute.xlu1 %2361 }
 0xf46   : > { %v4073_v28 = vpop.eup %4072  ;;  %4078 = vpow2.f32 %v2729_v3  ;;  %v2428_v38 = vadd.f32 %v4687_v13, %v2362_v17 }
 0xf47   : > { %v2731_v25 = vsel %vm1370_vm14, %v4073_v28, 0.0  ;;  %v2357_v16 = vpop.permute.xlu0 %2356 }
 0xf48   : > { %v4075_v4 = vpop.eup %4074  ;;  %2732 = vadd.xlane.f32.xlu0 %v2731_v25  ;;  %v2425_v34 = vadd.f32 %v4683_v10, %v2357_v16  ;;  %v2448_v45 = vpack.c.bf16 %v2428_v38, %v2428_v38  ;;  %v3623_v25 = vld [vmem:[%s4910_s13 + $0x1] ss:$0 sm:$0xff]  ;;  %v4041_v38 = vld [vmem:[%s4915_s18 + $0x28] sm:$0xff]  }
 0xf49   : > { %v2734_v5 = vsel %vm1370_vm14, %v4075_v4, 0.0 }
 0xf4a   : > { %2735 = vadd.xlane.f32.xlu1 %v2734_v5  ;;  %v2447_v42 = vpack.c.bf16 %v2425_v34, %v2425_v34 }
 0xf4e   : > { %v4077_v6 = vpop.eup %4076 }
 0xf4f   : > { %v2737_v7 = vsel %vm1370_vm14, %v4077_v6, 0.0 }
 0xf50   : > { %v4079_v9 = vpop.eup %4078  ;;  %2738 = vadd.xlane.f32.xlu0 %v2737_v7 }
 0xf51   : > { %v2740_v11 = vsel %vm1370_vm14, %v4079_v9, 0.0 }
 0xf52   : > { %2741 = vadd.xlane.f32.xlu1 %v2740_v11 }
 0xf63   : > { %2366 = vperm.xlu1 %4005, %v3604_v14  }
 0xf66   : > { %2371 = vperm.xlu0 %4004, %v3605_v15  }
 0xfd5   : > { %v2733_v18 = vpop.xlane.xlu0 %2732 }
 0xfd6   : > { %4080 = vrcp.f32 %v2733_v18 }
 0xfd7   : > { %v2736_v19 = vpop.xlane.xlu1 %2735 }
 0xfd8   : > { %4082 = vrcp.f32 %v2736_v19 }
 0xfdd   : > { %v2739_v21 = vpop.xlane.xlu0 %2738 }
 0xfde   : > { %4084 = vrcp.f32 %v2739_v21  ;;  %v4038_v21 = vld [vmem:[%s4913_s16 + $0x10] sm:$0xff]  }
 0xfdf   : > { %v2742_v22 = vpop.xlane.xlu1 %2741 }
 0xfe0   : > { %v4081_v23 = vpop.eup %4080  ;;  %4086 = vrcp.f32 %v2742_v22  ;;  %v4039_v22 = vld [vmem:[%s4913_s16 + $0x18] sm:$0xff]  }
 0xfe1   : > { %v2747_v24 = vmul.f32 %v4081_v23, %v4073_v28 }
 0xfe2   : > { %v4083_v27 = vpop.eup %4082 }
 0xfe3   : > { %v2751_v29 = vpack.c.bf16 %v2747_v24, %v2747_v24  ;;  %v2748_v31 = vmul.f32 %v4083_v27, %v4075_v4  ;;  %v2367_v44 = vpop.permute.xlu1 %2366 }
 0xfe4   : > { %v2433_v13 = vadd.f32 %v4681_v8, %v2367_v44  ;;  %v4036_v8 = vld [vmem:[%s4985_s0 + $0x10] sm:$0xff]  }
 0xfe5   : > { %v2759_v32 = vsel %vm1370_vm14, %v2751_v29, 0  ;;  %v2752_v33 = vpack.c.bf16 %v2748_v31, %v2748_v31  ;;  %v2372_v47 = vpop.permute.xlu0 %2371  ;;  %v3629_v29 = vld [vmem:[%s4911_s14 + $0x1] ss:$0 sm:$0xff] }
 0xfe6   : > { %3888 = vmatpush3.bf16.xpose.msra.mxu1 %v2759_v32  ;;  %v2436_v49 = vadd.f32 %v4685_v12, %v2372_v47  ;;  %v2449_v50 = vpack.c.bf16 %v2433_v13, %v2433_v13  ;;  %v4037_v12 = vld [vmem:[%s4985_s0 + $0x18] sm:$0xff]   ;;  %v3630_v32 = vld [vmem:[%s4912_s15 + $0x1] ss:$0 sm:$0xff]  ;;  %s4988_s0 = sld [smem:[#allocation27_spill]] }
 0xfe7   : > { %v2805_v35 = vsel %vm1370_vm14, %v2752_v33, 0  ;;  %3899 = vmatprep.subr.bf16.mxu1 %v4163_v20 }
 0xfe8   : > { %v4085_v36 = vpop.eup %4084  ;;  %3894 = vmatpush3.bf16.xpose.msra.mxu0 %v2805_v35  ;;  %v2450_v51 = vpack.c.bf16 %v2436_v49, %v2436_v49 }
 0xfe9   : > { %v2749_v39 = vmul.f32 %v4085_v36, %v4077_v6  ;;  %3905 = vmatprep.subr.bf16.mxu0 %v4163_v20  ;;  %v4040_v36 = vld [vmem:[%s4915_s18 + $0x20] sm:$0xff]  }
 0xfea   : > { %v4087_v40 = vpop.eup %4086 }
 0xfeb   : > { %v2753_v43 = vpack.c.bf16 %v2749_v39, %v2749_v39  ;;  %v2750_v52 = vmul.f32 %v4087_v40, %v4079_v9  ;;  %v4042_v39 = vld [vmem:[%s4915_s18 + $0x30] sm:$0xff]   ;;  %v4043_v40 = vld [vmem:[%s4915_s18 + $0x38] sm:$0xff]  }
 0xfed   : > { %3890 = vmatmul.mubr.msk.bf16.vlgmr.msra.gmra.mrb[52].mxu1 %vm1370_vm14, %v2447_v42  ;;  %v2851_v10 = vsel %vm1370_vm14, %v2753_v43, 0  ;;  %v2754_v46 = vpack.c.bf16 %v2750_v52, %v2750_v52  ;;  %v3636_v42 = vld [vmem:[%s4914_s17 + $0x1] ss:$0 sm:$0xff] }
 0xfee   : > { %3900 = vmatpush3.bf16.xpose.msra.mxu1 %v2851_v10  ;;  %3901 = vmatprep.mubr.msk.bf16.mxu1 %vm4165_vm12, %v4163_v20 }
 0xfef   : > { %3896 = vmatmul.mubr.msk.bf16.vlgmr.msra.gmra.mrb[36].mxu0 %vm1370_vm14, %v2448_v45  ;;  %v2897_v48 = vsel %vm1370_vm14, %v2754_v46, 0  ;;  %3911 = vmatprep.subr.bf16.mxu1 %v4163_v20 }
 0xff0   : > { %3906 = vmatpush3.bf16.xpose.msra.mxu0 %v2897_v48  ;;  %3907 = vmatprep.mubr.msk.bf16.mxu0 %vm4165_vm12, %v4163_v20 }
 0xff1   : > { %3919 = vmatprep.subr.bf16.mxu0 %v4163_v20 }
 0xff5   : > { %3902 = vmatmul.mubr.msk.bf16.vlgmr.msra.gmra.mrb[56].mxu1 %vm1370_vm14, %v2449_v50 }
 0xff6   : > { %3915 = vmatprep.mubr.msk.bf16.mxu1 %vm4165_vm12, %v4163_v20  ;;  %3912 = vmatpush3.bf16.msra.mxu1 %v4036_v8 }
 0xff7   : > { %3908 = vmatmul.mubr.msk.bf16.vlgmr.msra.gmra.mrb[40].mxu0 %vm1370_vm14, %v2450_v51  ;;  %3913 = vmatprep.subr.bf16.mxu1 %v4163_v20  ;;  %v3649_v51 = vld [vmem:[%s4916_s19 + $0x1] ss:$0 sm:$0xff] }
 0xff8   : > { %3923 = vmatprep.mubr.msk.bf16.mxu0 %vm4165_vm12, %v4163_v20  ;;  %3920 = vmatpush3.bf16.msra.mxu0 %v4038_v21 }
 0xff9   : > { %3921 = vmatprep.subr.bf16.mxu0 %v4163_v20 }
 0xffa   : > { %3914 = vmatpush3.bf16.msra.mxu1 %v4037_v12 }
 0xffb   : > { %3927 = vmatprep.subr.bf16.mxu1 %v4163_v20 }
 0xffc   : > { %3922 = vmatpush3.bf16.msra.mxu0 %v4039_v22 }
 0xffd   : > { %3939 = vmatprep.subr.bf16.mxu0 %v4163_v20 }
0x10c0   : > { %v2795_v53 = vpop.f32.mrb[52].mxu1 }
0x10c1   : > { %v3891_v54 = vpop.f32.mrb[53].mxu1 }
0x10c2   : > { %v2798_v55 = vpop.f32.mrb[54].mxu1  ;;  %v2841_v56 = vpop.f32.mrb[36].mxu0 }
0x10c3   : > { %v2939_v57 = vpack.c.bf16 %v2841_v56, %v2795_v53  ;;  %v3892_v58 = vpop.f32.mrb[55].mxu1  ;;  %v3897_v59 = vpop.f32.mrb[37].mxu0 }
0x10c4   : > { %v2844_v60 = vpop.f32.mrb[38].mxu0 }
0x10c5   : > { %2954 = vxpose.xlu1.c.b16.start [1/2] (short) (narrow) %v2939_v57, 16  ;;  %v3898_v61 = vpop.f32.mrb[39].mxu0 }
0x10c8   : > { %v2887_v62 = vpop.f32.mrb[56].mxu1 }
0x10c9   : > { %v3903_v30 = vpop.f32.mrb[57].mxu1 }
0x10ca   : > { %v2890_v41 = vpop.f32.mrb[58].mxu1  ;;  %v2933_v63 = vpop.f32.mrb[40].mxu0  ;;  %v4044_v30 = vld [vmem:[%s4919_s22] sm:$0xff]  }
0x10cb   : > { %v2940_v0 = vpack.c.bf16 %v2933_v63, %v2887_v62  ;;  %v3904_v26 = vpop.f32.mrb[59].mxu1  ;;  %v3909_v1 = vpop.f32.mrb[41].mxu0  ;;  %v4045_v41 = vld [vmem:[%s4919_s22 + $0x8] sm:$0xff]  }
0x10cc   : > { %v2936_v2 = vpop.f32.mrb[42].mxu0 }
0x10cd   : > { %v3910_v3 = vpop.f32.mrb[43].mxu0  ;;  %2955 = vxpose.xlu1.c.b16.end [2/2] (short) (narrow) %v2940_v0, 16  ;;  %v3657_v2 = vld [vmem:[%s4917_s20 + $0x1] ss:$0 sm:$0xff] }
0x112f   : > { %v2962_v28 = vpop.trf.xlu1 }
0x1130   : > { %3916 = vmatmul.mubr.msk.bf16.vlgmr.msra.gmra.mrb[60].mxu1 %vm1029_vm11, %v2962_v28  ;;  %v3658_v28 = vld [vmem:[%s4918_s21 + $0x1] ss:$0 sm:$0xff] }
0x1131   : > { %3935 = vmatprep.mubr.msk.bf16.mxu1 %vm4165_vm12, %v4163_v20  ;;  %3928 = vmatpush3.bf16.msra.mxu1 %v4040_v36 }
0x1132   : > { %3929 = vmatprep.subr.bf16.mxu1 %v4163_v20 }
0x1135   : > { %3930 = vmatpush3.bf16.msra.mxu1 %v4041_v38  ;;  %v3663_v38 = vld [vmem:[%s4986_s10] ss:$0 sm:$0xff] }
0x1136   : > { %3931 = vmatprep.subr.bf16.mxu1 %v4163_v20 }
0x1139   : > { %3932 = vmatpush3.bf16.msra.mxu1 %v4042_v39 }
0x113a   : > { %3933 = vmatprep.subr.bf16.mxu1 %v4163_v20 }
0x113d   : > { %3934 = vmatpush3.bf16.msra.mxu1 %v4043_v40  ;;  %v3664_v40 = vld [vmem:[%s4987_s6] ss:$0 sm:$0xff]  ;;  %s4855_s6 = scalar_lea.hbm %s4990_s24, %s3670_s2 }
0x1203   : > { %v3019_v4 = vpop.f32.mrb[60].mxu1 }
0x1204   : > { %v3020_v5 = vadd.f32 %v3623_v25, %v3019_v4  ;;  %v3917_v6 = vpop.f32.mrb[61].mxu1 }
0x1205   : > { %v3022_v7 = vpop.f32.mrb[62].mxu1  ;;  %v3659_v6 = vld [vmem:[%s4920_s23] ss:$0 sm:$0xff] }
0x1206   : > { %v3918_v9 = vpop.f32.mrb[63].mxu1  ;;  %v3025_v11 = vadd.f32 %v3020_v5, %v4643_v37 }
0x1208   : > { %v3030_v14 = vsel %vm1029_vm11, %v3025_v11, 0.0 }
0x1209   : > { %3031 = vadd.xlane.f32.xlu0 %v3030_v14 }
0x1296   : > { %v3032_v15 = vpop.xlane.xlu0 %3031 }
0x1297   : > { %v3033_v16 = vmul.f32 0.03125, %v3032_v15 }
0x1299   : > { %v3034_v17 = vsub.f32 %v3025_v11, %v3033_v16 }
0x129b   : > { %v3035_v18 = vmul.f32 %v3034_v17, %v3034_v17 }
0x129d   : > { %v3036_v19 = vsel %vm1029_vm11, %v3035_v18, 0.0 }
0x129e   : > { %3037 = vadd.xlane.f32.xlu0 %v3036_v19 }
0x132b   : > { %v3038_v37 = vpop.xlane.xlu0 %3037 }
0x132c   : > { %v3039_v23 = vmul.f32 0.03125, %v3038_v37 }
0x132e   : > { %v3040_v24 = vadd.f32 1e-12, %v3039_v23 }
0x1330   : > { %4088 = vrsqrt.f32 %v3040_v24 }
0x133a   : > { %v4089_v27 = vpop.eup %4088 }
0x133b   : > { %v3042_v31 = vmul.f32 %v4089_v27, %v3034_v17 }
0x133d   : > { %v3049_v33 = vmul.f32 %v3629_v29, %v3042_v31  ;;  %v4046_v31 = vld [vmem:[%s4923_s26] sm:$0xff]  }
0x133f   : > { %v3056_v34 = vadd.f32 %v3630_v32, %v3049_v33  ;;  %v4047_v32 = vld [vmem:[%s4923_s26 + $0x8] sm:$0xff]  }
0x1341   : > { %v3057_v35 = vpack.c.bf16 %v3056_v34, %v3056_v34 }
0x1343   : > { %3924 = vmatmul.mubr.msk.bf16.vlgmr.msra.gmra.mrb[44].mxu0 %vm1029_vm11, %v3057_v35 }
0x1344   : > { %3943 = vmatprep.mubr.msk.bf16.mxu0 %vm4165_vm12, %v4163_v20  ;;  %3940 = vmatpush3.bf16.msra.mxu0 %v4044_v30 }
0x1345   : > { %3941 = vmatprep.subr.bf16.mxu0 %v4163_v20 }
0x1348   : > { %3942 = vmatpush3.bf16.msra.mxu0 %v4045_v41 }
0x1349   : > { %3947 = vmatprep.subr.bf16.mxu0 %v4163_v20 }
0x1416   : > { %v3120_v43 = vpop.f32.mrb[44].mxu0 }
0x1417   : > { %v3121_v52 = vadd.f32 %v3636_v42, %v3120_v43  ;;  %v3925_v44 = vpop.f32.mrb[45].mxu0 }
0x1418   : > { %v3123_v45 = vpop.f32.mrb[46].mxu0 }
0x1419   : > { %v3127_v10 = vmul.f32 0.70710677, %v3121_v52  ;;  %v3926_v46 = vpop.f32.mrb[47].mxu0  ;;  %v3126_v13 = vmul.f32 0.5, %v3121_v52 }
0x141b   : > { %4090 = verf.f32 %v3127_v10 }
0x1425   : > { %v4091_v47 = vpop.eup %4090 }
0x1426   : > { %v3129_v48 = vadd.f32 1.0, %v4091_v47 }
0x1428   : > { %v3130_v49 = vmul.f32 %v3129_v48, %v3126_v13 }
0x142a   : > { %v3131_v50 = vpack.c.bf16 %v3130_v49, %v3130_v49 }
0x142c   : > { %3936 = vmatmul.mubr.msk.bf16.vlgmr.msra.gmra.mrb[64].mxu1 %vm2076_vm15, %v3131_v50 }
0x14ff   : > { %v3210_v8 = vpop.f32.mrb[64].mxu1 }
0x1500   : > { %v3211_v12 = vadd.f32 %v3649_v51, %v3210_v8  ;;  %v3937_v53 = vpop.f32.mrb[65].mxu1 }
0x1501   : > { %v3213_v54 = vpop.f32.mrb[66].mxu1 }
0x1502   : > { %v3938_v55 = vpop.f32.mrb[67].mxu1  ;;  %v3216_v56 = vadd.f32 %v3211_v12, %v3056_v34 }
0x1504   : > { %v3221_v57 = vsel %vm1029_vm11, %v3216_v56, 0.0 }
0x1505   : > { %3222 = vadd.xlane.f32.xlu0 %v3221_v57 }
0x1592   : > { %v3223_v58 = vpop.xlane.xlu0 %3222 }
0x1593   : > { %v3224_v59 = vmul.f32 0.03125, %v3223_v58 }
0x1595   : > { %v3225_v60 = vsub.f32 %v3216_v56, %v3224_v59 }
0x1597   : > { %v3226_v61 = vmul.f32 %v3225_v60, %v3225_v60 }
0x1599   : > { %v3227_v62 = vsel %vm1029_vm11, %v3226_v61, 0.0 }
0x159a   : > { %3228 = vadd.xlane.f32.xlu1 %v3227_v62 }
0x1627   : > { %v3229_v63 = vpop.xlane.xlu1 %3228 }
0x1628   : > { %v3230_v0 = vmul.f32 0.03125, %v3229_v63 }
0x162a   : > { %v3231_v26 = vadd.f32 1e-12, %v3230_v0 }
0x162c   : > { %4092 = vrsqrt.f32 %v3231_v26 }
0x1636   : > { %v4093_v1 = vpop.eup %4092 }
0x1637   : > { %v3233_v3 = vmul.f32 %v4093_v1, %v3225_v60 }
0x1639   : > { %v3240_v25 = vmul.f32 %v3657_v2, %v3233_v3 }
0x163b   : > { %v3247_v4 = vadd.f32 %v3658_v28, %v3240_v25 }
0x163d   : > { %v3248_v5 = vpack.c.bf16 %v3247_v4, %v3247_v4 }
0x163f   : > { %3944 = vmatmul.mubr.msk.bf16.vlgmr.msra.gmra.mrb[48].mxu0 %vm1029_vm11, %v3248_v5 }
0x1640   : > { %3951 = vmatprep.mubr.msk.bf16.mxu0 %vm4165_vm12, %v4163_v20  ;;  %3948 = vmatpush3.bf16.msra.mxu0 %v4046_v31 }
0x1641   : > { %3949 = vmatprep.subr.bf16.mxu0 %v4163_v20  ;;  %v3665_v20 = vld [vmem:[%s4988_s0] ss:$0 sm:$0xff]  ;;  %s3418_s0 = scalar_lea.sflag [#allocation3], %s858_s30 }
0x1644   : > { %3950 = vmatpush3.bf16.msra.mxu0 %v4047_v32 }
0x1712   : > { %v3309_v7 = vpop.f32.mrb[48].mxu0 }
0x1713   : > { %v3310_v9 = vadd.f32 %v3659_v6, %v3309_v7  ;;  %v3945_v11 = vpop.f32.mrb[49].mxu0 }
0x1714   : > { %v3312_v14 = vpop.f32.mrb[50].mxu0 }
0x1715   : > { %v3316_v15 = vmul.f32 0.70710677, %v3310_v9  ;;  %v3946_v16 = vpop.f32.mrb[51].mxu0  ;;  %v3315_v18 = vmul.f32 0.5, %v3310_v9 }
0x1717   : > { %4094 = verf.f32 %v3316_v15 }
0x1721   : > { %v4095_v17 = vpop.eup %4094 }
0x1722   : > { %v3318_v19 = vadd.f32 1.0, %v4095_v17 }
0x1724   : > { %v3319_v21 = vmul.f32 %v3318_v19, %v3315_v18 }
0x1726   : > { %v3322_v22 = vsel %vm1029_vm11, %v3319_v21, 0.0 }
0x1727   : > { %3323 = vadd.xlane.f32.xlu0 %v3322_v22 }
0x17b4   : > { %v3324_v37 = vpop.xlane.xlu0 %3323 }
0x17b5   : > { %v3325_v23 = vmul.f32 0.03125, %v3324_v37 }
0x17b7   : > { %v3326_v24 = vsub.f32 %v3319_v21, %v3325_v23 }
0x17b9   : > { %v3327_v27 = vmul.f32 %v3326_v24, %v3326_v24 }
0x17bb   : > { %v3328_v29 = vsel %vm1029_vm11, %v3327_v27, 0.0 }
0x17bc   : > { %3329 = vadd.xlane.f32.xlu0 %v3328_v29 }
0x1849   : > { %v3330_v33 = vpop.xlane.xlu0 %3329 }
0x184a   : > { %v3331_v34 = vmul.f32 0.03125, %v3330_v33 }
0x184c   : > { %v3332_v35 = vadd.f32 1e-12, %v3331_v34 }
0x184e   : > { %4096 = vrsqrt.f32 %v3332_v35 }
0x1858   : > { %v4097_v36 = vpop.eup %4096 }
0x1859   : > { %v3334_v39 = vmul.f32 %v4097_v36, %v3326_v24 }
0x185b   : > { %v3341_v42 = vmul.f32 %v3663_v38, %v3334_v39 }
0x185d   : > { %v3348_v43 = vadd.f32 %v3664_v40, %v3341_v42 }
0x185f   : > { %v3349_v52 = vpack.c.bf16 %v3348_v43, %v3348_v43 }
0x1861   : > { %3952 = vmatmul.mubr.msk.bf16.vlgmr.msra.gmra.mrb[52].mxu0 %vm1029_vm11, %v3349_v52 }
0x1934   : > { %v3410_v44 = vpop.f32.mrb[52].mxu0 }
0x1935   : > { %v3411_v45 = vadd.f32 %v3665_v20, %v3410_v44  ;;  %v3953_v10 = vpop.f32.mrb[53].mxu0 }
0x1936   : > { %v3413_v46 = vpop.f32.mrb[54].mxu0 }
0x1937   : > { %3416 = vst [vmem:[%s860_s4] sm:$0xff] %v3411_v45  ;;  %v3954_v47 = vpop.f32.mrb[55].mxu0 }
0x1938   : > { %4111 = shalt.err (!%p4108_p3)
}
0x1939   : > { %s4112_s2 = scalar_lea.hbm %s4855_s6, 128  ;;  %s4116_s10 = scalar_lea.hbm %s4990_s24, 256 }
0x193a   : > { %p4113_p4 = scmp.ne.s32.totalorder %s4855_s6, %s4112_s2  ;;  %p4117_p9 = scmp.lt.u32.totalorder %s4855_s6, %s4990_s24 }
0x193b   : > { %p4118_p10 = scmp.lt.u32.totalorder %s4116_s10, %s4112_s2  ;;  %p4120_p12 = scmp.lt.u32.totalorder %s4112_s2, %s4855_s6 }
0x193c   : > { %p4114_p7 = pnand %p4113_p4, %p4350_p5 }
0x193d   : > { %p4119_p11 = por %p4118_p10, %p4117_p9 }
0x193e   : > { %p4115_p8 = pneg %p4114_p7 }
0x193f   : > { %p4121_p13 = por %p4120_p12, %p4119_p11 }
0x1941   : > { %p4122_p0 = pnand %p4121_p13, %p4115_p8 }
0x1943   : > { %4125 = shalt.err (!%p4122_p0)
}
0x1944   : > { %3961 = dma.vmem_to_hbm [thread:$0]  (%p4350_p5), %s4857_s9, 128, %s4855_s6, %s3418_s0  }
0x1945 PF: > { %s4991_s3 = sld [smem:[#allocation7_spill]]  ;;  %s4992_s7 = sld [smem:[#allocation5_spill]] }
0x194b   : > { %p3967_p1 = scmp.ge.s32.totalorder %s4991_s3, 2  ;;  %s3443_s30 = sand.u32 1, %s4992_s7  }
0x194c   : > { %s3444_s4 = scalar_lea.sflag [#allocation3], %s3443_s30 }
0x194d   : > { %p3964_p2 = pnand %p3967_p1, %p4354_p6 }
0x194f   : > { %4143 = dma.done.wait (!%p3964_p2), %s3444_s4, 128  }
0x1950   : > { %4145 = vsyncadd (!%p3964_p2), %s3444_s4, 4294967168  ;;  %s4994_s30 = sld [smem:[#allocation8_spill]]  ;;  %s4995_s2 = sld [smem:[#allocation6_spill]] }
0x1951   : > { %s4996_s9 = sld [smem:[#allocation9_spill]]  ;;  %s4997_s8 = smov %s4152_s5 }
0x1956   : > { %p38_p3 = scmp.ge.s32.totalorder %s4994_s30, 4   ;;  %s4998_s5 = smov %s4995_s2 }
0x1958   :  { %40 = sbr.rel (!%p38_p3) target bundleno = 21 (0x15), region = 189 }
0x195f   :  { %3449 = vsyncpa [#allocation3], 1 }
0x1960   :  { %3451 = vsyncpa [#allocation3 + $0x1], 1 }

</bundles_post_ra>
